<compile_context>
chip_gen: v7x
topology: tpu7x:2x2x1
jax: 0.10.0
libtpu: 0.0.40
codegen_flags: <defaults>
</compile_context>

<pallas_src>
import functools
import math

import jax
import jax.numpy as jnp
from jax import lax
from jax.experimental import pallas as pl
from jax.experimental.pallas import tpu as pltpu


# ----------------------------- kernel helpers ------------------------------ #

def _layernorm(v, g, b, eps=1e-6):
    # Matches nn.LayerNorm(hidden_size, eps=1e-06) (biased variance, last dim).
    mu = jnp.mean(v, axis=-1, keepdims=True)
    var = jnp.mean((v - mu) * (v - mu), axis=-1, keepdims=True)
    return (v - mu) * lax.rsqrt(var + eps) * g + b


def _gelu_exact(v):
    # Exact (erf-based) GELU, matching torch.nn.functional.gelu default.
    return 0.5 * v * (1.0 + lax.erf(v * (1.0 / math.sqrt(2.0))))


# ------------------------------- kernel ------------------------------------ #

def encoder_block_kernel(
    x_ref,                        # (S, H) f32  (batch dim squeezed by BlockSpec)
    ln1_g_ref, ln1_b_ref,         # (1, H) f32
    wqkv_ref, bqkv_ref,           # (H, 3H) bf16 / (1, 3H) f32   [Q|K|V], scale folded into Q
    wo_ref, bo_ref,               # (H, H) bf16  / (1, H) f32
    ln2_g_ref, ln2_b_ref,         # (1, H) f32
    w1_ref, b1_ref,               # (H, M) bf16  / (1, M) f32
    w2_ref, b2_ref,               # (M, H) bf16  / (1, H) f32
    o_ref,                        # (S, H)
    ctx_ref,                      # VMEM scratch (S, H) f32: per-head context assembly
    *, num_heads: int,
):
    f32 = jnp.float32
    bf16 = jnp.bfloat16

    x = x_ref[...]                                                   # (S, H) f32
    S, H = x.shape
    hd = H // num_heads

    # ---------------- Attention branch: x + MHSA(LN1(x)) ----------------
    xn = _layernorm(x, ln1_g_ref[...], ln1_b_ref[...])

    # One lane-dense (S,H)@(H,3H) MXU matmul for Q/K/V; 1/sqrt(hd) is already
    # folded into the Q columns of wqkv / bqkv (wrapper-side).
    qkv = jnp.dot(xn.astype(bf16), wqkv_ref[...],
                  preferred_element_type=f32) + bqkv_ref[...]        # (S, 3H) f32
    qkv = qkv.astype(bf16)  # single cast of the whole slab

    # H-wide splits (128-lane-aligned at real ViT widths).
    q2 = qkv[:, :H]
    k2 = qkv[:, H:2 * H]
    v2 = qkv[:, 2 * H:]

    # Per-head attention.  Each head's (S,hd) context goes straight into its
    # lane slice of the f32 ctx scratch, so (a) only one head's intermediates
    # are live at a time and (b) the output projection below is a single
    # lane-dense (S,H)@(H,H) matmul — no (nh,S,H) intermediate, no VPU-side
    # head reduction.
    for h in range(num_heads):              # static offsets -> static slices
        lo = h * hd
        qh = q2[:, lo:lo + hd]                                       # (S, hd) bf16
        kh = k2[:, lo:lo + hd]
        vh = v2[:, lo:lo + hd]
        s = lax.dot_general(qh, kh, (((1,), (1,)), ((), ())),
                            preferred_element_type=f32)              # (S, S) f32
        s = s - jnp.max(s, axis=-1, keepdims=True)
        p = jnp.exp(s)
        p = p * pl.reciprocal(jnp.sum(p, axis=-1, keepdims=True), approx=True)
        ctx_ref[:, lo:lo + hd] = jnp.dot(p.astype(bf16), vh,
                                         preferred_element_type=f32)

    attn_out = jnp.dot(ctx_ref[...].astype(bf16), wo_ref[...],
                       preferred_element_type=f32) + bo_ref[...]     # (S, H) f32
    x1 = x + attn_out                                                # residual 1

    # ---------------- MLP branch: x1 + MLP(LN2(x1)) ----------------
    xn2 = _layernorm(x1, ln2_g_ref[...], ln2_b_ref[...])
    h1 = jnp.dot(xn2.astype(bf16), w1_ref[...],
                 preferred_element_type=f32) + b1_ref[...]
    h1 = _gelu_exact(h1)
    h2 = jnp.dot(h1.astype(bf16), w2_ref[...],
                 preferred_element_type=f32) + b2_ref[...]

    # With H < 128 (test config) this store is lane-masked; at real ViT widths
    # (H a multiple of 128) it is lane-dense automatically.
    o_ref[...] = (x1 + h2).astype(o_ref.dtype)                       # residual 2
    # TODO(synk): dropout (attn/proj/mlp) is identity in eval mode and the
    # attention-probability "vis" output of Attention(vis=True) is not returned.


# ------------------------------- wrapper ------------------------------------ #

def _derive_vmem_limit(ordered, S, H, mlp_dim, *, weights_double_buffered):
    """Derived VMEM budget with headroom, clamped to the chip's capacity."""
    weight_bytes = sum(int(p.size) * p.dtype.itemsize for p in ordered)
    if weights_double_buffered:
        weight_bytes *= 2
    io_bytes = 2 * 2 * S * H * 4                     # double-buffered in/out blocks
    inter_bytes = (S * 3 * H * 6                     # qkv slab (f32 + bf16)
                   + S * S * 8                       # per-head scores + probs (f32)
                   + 4 * S * H * 4                   # xn / x1 / attn_out / ctx scratch
                   + S * mlp_dim * 6)                # mlp hidden (f32 + bf16)
    budget = int(1.5 * (weight_bytes + io_bytes + inter_bytes)) + (4 << 20)
    try:
        cap = int(pltpu.get_tpu_info().vmem_capacity_bytes)
    except Exception:
        cap = 64 << 20                               # v7x per-TC VMEM (smallest gen)
    return max(16 << 20, min(budget, int(0.9 * cap)))


def transformer_encoder_block(x, params, num_heads, *, weight_dtype=jnp.bfloat16):
    """x: (B, S, H) float32.  params: dict of float32 arrays (see __main__)."""
    B, S, H = x.shape
    hd = H // num_heads
    mlp_dim = params["w1"].shape[1]
    scale = 1.0 / math.sqrt(hd)

    # ---- wrapper-side layout plumbing (plain XLA ops, not in-kernel) ----
    # Fold the attention scale into the Q projection and lay the fused QKV
    # weight out as [Q | K | V], each H-wide.
    wqkv = jnp.concatenate(
        [params["wq"] * scale, params["wk"], params["wv"]], axis=1
    ).astype(weight_dtype)                                           # (H, 3H)
    bqkv = jnp.concatenate(
        [params["bq"] * scale, params["bk"], params["bv"]], axis=-1
    ).astype(jnp.float32)                                            # (1, 3H)
    wo = params["wo"].astype(weight_dtype)                           # (H, H)
    w1 = params["w1"].astype(weight_dtype)                           # (H, M)
    w2 = params["w2"].astype(weight_dtype)                           # (M, H)

    ordered = [
        params["ln1_g"], params["ln1_b"],
        wqkv, bqkv, wo, params["bo"],
        params["ln2_g"], params["ln2_b"],
        w1, params["b1"], w2, params["b2"],
    ]

    kernel = functools.partial(encoder_block_kernel, num_heads=num_heads)

    # Advisory cost estimate so XLA can schedule/overlap this call sensibly.
    flops = B * (2 * S * H * 3 * H            # QKV projection
                 + 4 * S * S * H              # scores + context
                 + 2 * S * H * H              # output projection
                 + 4 * S * H * mlp_dim)       # MLP
    transcendentals = B * (num_heads * S * S + S * mlp_dim + 2 * S)
    bytes_accessed = (2 * B * S * H * x.dtype.itemsize
                      + sum(int(p.size) * p.dtype.itemsize for p in ordered))
    cost = pl.CostEstimate(flops=flops, transcendentals=transcendentals,
                           bytes_accessed=bytes_accessed)

    def build(single_buffer_weights):
        def weight_spec(p):  # all weights/biases here are 2-D, constant index
            if single_buffer_weights:
                # Constant index map => never re-fetched; one VMEM buffer is
                # enough (halves resident-weight footprint — matters on v7x).
                return pl.BlockSpec(p.shape, lambda b: (0, 0),
                                    pipeline_mode=pl.Buffered(1))
            return pl.BlockSpec(p.shape, lambda b: (0, 0))

        in_specs = [pl.BlockSpec((None, S, H), lambda b: (b, 0, 0))]
        in_specs += [weight_spec(p) for p in ordered]

        return pl.pallas_call(
            kernel,
            out_shape=jax.ShapeDtypeStruct((B, S, H), x.dtype),
            grid_spec=pltpu.PrefetchScalarGridSpec(
                num_scalar_prefetch=0,
                # One batch element per grid step; "parallel" lets v7x shard
                # the batch across its 2 TensorCores.
                grid=(B,),
                in_specs=in_specs,
                out_specs=pl.BlockSpec((None, S, H), lambda b: (b, 0, 0)),
                scratch_shapes=[pltpu.VMEM((S, H), jnp.float32)],
            ),
            compiler_params=pltpu.CompilerParams(
                dimension_semantics=("parallel",),
                vmem_limit_bytes=_derive_vmem_limit(
                    ordered, S, H, mlp_dim,
                    weights_double_buffered=not single_buffer_weights),
            ),
            cost_estimate=cost,
        )

    # TODO(synk): for very long sequences (per-head (S,S) f32 scores no longer
    # fit VMEM) add a q-tile grid axis with flash-style online softmax; at ViT
    # patch counts the whole score tile fits comfortably.
    try:
        return build(single_buffer_weights=True)(x, *ordered)
    except Exception:
        # Fallback for JAX versions without BlockSpec(pipeline_mode=...).
        return build(single_buffer_weights=False)(x, *ordered)


# --------------------------- pure-JAX reference ----------------------------- #

def reference_block(x, p, num_heads):
    def ln(v, g, b):
        mu = v.mean(-1, keepdims=True)
        var = ((v - mu) ** 2).mean(-1, keepdims=True)
        return (v - mu) / jnp.sqrt(var + 1e-6) * g + b

    B, S, H = x.shape
    hd = H // num_heads

    xn = ln(x, p["ln1_g"], p["ln1_b"])
    q = xn @ p["wq"] + p["bq"]
    k = xn @ p["wk"] + p["bk"]
    v = xn @ p["wv"] + p["bv"]

    def split(t):  # (B,S,H) -> (B,nh,S,hd)
        return t.reshape(B, S, num_heads, hd).transpose(0, 2, 1, 3)

    qh, kh, vh = split(q), split(k), split(v)
    s = jnp.einsum("bhqd,bhkd->bhqk", qh, kh) / math.sqrt(hd)
    a = jax.nn.softmax(s, axis=-1)
    ctx = jnp.einsum("bhqk,bhkd->bhqd", a, vh).transpose(0, 2, 1, 3).reshape(B, S, H)
    x1 = x + (ctx @ p["wo"] + p["bo"])

    xn2 = ln(x1, p["ln2_g"], p["ln2_b"])
    h1 = jax.nn.gelu(xn2 @ p["w1"] + p["b1"], approximate=False)
    return x1 + (h1 @ p["w2"] + p["b2"])


# ---------------------------------- main ------------------------------------ #

if __name__ == "__main__":
    # Small config consistent with the module's forward.
    B, S, H = 2, 8, 32          # batch, sequence length, hidden_size
    NUM_HEADS = 4
    MLP_DIM = 64

    key = jax.random.PRNGKey(0)
    keys = jax.random.split(key, 8)

    def w(k, shape):
        return (0.02 * jax.random.normal(k, shape)).astype(jnp.float32)

    params = {
        # LayerNorm params (kept 2-D, shape (1, dim), for clean VMEM layout)
        "ln1_g": jnp.ones((1, H), jnp.float32),
        "ln1_b": jnp.zeros((1, H), jnp.float32),
        "ln2_g": jnp.ones((1, H), jnp.float32),
        "ln2_b": jnp.zeros((1, H), jnp.float32),
        # Attention projections, stored (in, out)
        "wq": w(keys[0], (H, H)), "bq": jnp.zeros((1, H), jnp.float32),
        "wk": w(keys[1], (H, H)), "bk": jnp.zeros((1, H), jnp.float32),
        "wv": w(keys[2], (H, H)), "bv": jnp.zeros((1, H), jnp.float32),
        "wo": w(keys[3], (H, H)), "bo": jnp.zeros((1, H), jnp.float32),
        # MLP
        "w1": w(keys[4], (H, MLP_DIM)), "b1": jnp.zeros((1, MLP_DIM), jnp.float32),
        "w2": w(keys[5], (MLP_DIM, H)), "b2": jnp.zeros((1, H), jnp.float32),
    }

    x = jax.random.normal(keys[6], (B, S, H), dtype=jnp.float32)

    out = transformer_encoder_block(x, params, NUM_HEADS)
    out = jax.block_until_ready(out)

    ref = reference_block(x, params, NUM_HEADS)
    assert out.shape == (B, S, H)
    max_err = float(jnp.max(jnp.abs(out - ref)))
    # Tolerance accounts for bf16 MXU operands / weights (f32 accumulation)
    # and the approximate softmax reciprocal.
    assert jnp.allclose(out, ref, atol=1e-2, rtol=1e-2), f"mismatch: {max_err}"

    print("KERNEL_OK")
</pallas_src>

<mosaic_0001>
module attributes {stable_mosaic.version = 11 : i64} {
  func.func @encoder_block_kernel(%arg0: i32, %arg1: memref<1x8x32xf32, #tpu.memory_space<vmem>>, %arg2: memref<1x32xf32, #tpu.memory_space<vmem>>, %arg3: memref<1x32xf32, #tpu.memory_space<vmem>>, %arg4: memref<32x96xbf16, #tpu.memory_space<vmem>>, %arg5: memref<1x96xf32, #tpu.memory_space<vmem>>, %arg6: memref<32x32xbf16, #tpu.memory_space<vmem>>, %arg7: memref<1x32xf32, #tpu.memory_space<vmem>>, %arg8: memref<1x32xf32, #tpu.memory_space<vmem>>, %arg9: memref<1x32xf32, #tpu.memory_space<vmem>>, %arg10: memref<32x64xbf16, #tpu.memory_space<vmem>>, %arg11: memref<1x64xf32, #tpu.memory_space<vmem>>, %arg12: memref<64x32xbf16, #tpu.memory_space<vmem>>, %arg13: memref<1x32xf32, #tpu.memory_space<vmem>>, %arg14: memref<1x8x32xf32, #tpu.memory_space<vmem>>, %arg15: memref<8x32xf32, #tpu.memory_space<vmem>>) attributes {dimension_semantics = [#tpu.dimension_semantics<parallel>], iteration_bounds = array<i64: 2>, scalar_prefetch = 0 : i64, scratch_operands = 1 : i64, tpu.core_type = #tpu.core_type<tc>, window_params = [{transform_indices = @transform_0, window_bounds = array<i64: 1, 8, 32>}, {pipeline_mode = #tpu.pipeline_mode<synchronous>, transform_indices = @transform_1, window_bounds = array<i64: 1, 32>}, {pipeline_mode = #tpu.pipeline_mode<synchronous>, transform_indices = @transform_2, window_bounds = array<i64: 1, 32>}, {pipeline_mode = #tpu.pipeline_mode<synchronous>, transform_indices = @transform_3, window_bounds = array<i64: 32, 96>}, {pipeline_mode = #tpu.pipeline_mode<synchronous>, transform_indices = @transform_4, window_bounds = array<i64: 1, 96>}, {pipeline_mode = #tpu.pipeline_mode<synchronous>, transform_indices = @transform_5, window_bounds = array<i64: 32, 32>}, {pipeline_mode = #tpu.pipeline_mode<synchronous>, transform_indices = @transform_6, window_bounds = array<i64: 1, 32>}, {pipeline_mode = #tpu.pipeline_mode<synchronous>, transform_indices = @transform_7, window_bounds = array<i64: 1, 32>}, {pipeline_mode = #tpu.pipeline_mode<synchronous>, transform_indices = @transform_8, window_bounds = array<i64: 1, 32>}, {pipeline_mode = #tpu.pipeline_mode<synchronous>, transform_indices = @transform_9, window_bounds = array<i64: 32, 64>}, {pipeline_mode = #tpu.pipeline_mode<synchronous>, transform_indices = @transform_10, window_bounds = array<i64: 1, 64>}, {pipeline_mode = #tpu.pipeline_mode<synchronous>, transform_indices = @transform_11, window_bounds = array<i64: 64, 32>}, {pipeline_mode = #tpu.pipeline_mode<synchronous>, transform_indices = @transform_12, window_bounds = array<i64: 1, 32>}, {transform_indices = @transform_13, window_bounds = array<i64: 1, 8, 32>}]} {
    %c0 = arith.constant 0 : index
    %c0_0 = arith.constant 0 : index
    %c0_1 = arith.constant 0 : index
    %0 = vector.load %arg1[%c0, %c0_0, %c0_1] : memref<1x8x32xf32, #tpu.memory_space<vmem>>, vector<1x8x32xf32>
    %1 = vector.shape_cast %0 : vector<1x8x32xf32> to vector<8x32xf32>
    %c0_2 = arith.constant 0 : index
    %c0_3 = arith.constant 0 : index
    %2 = vector.load %arg2[%c0_2, %c0_3] : memref<1x32xf32, #tpu.memory_space<vmem>>, vector<1x32xf32>
    %c0_4 = arith.constant 0 : index
    %c0_5 = arith.constant 0 : index
    %3 = vector.load %arg3[%c0_4, %c0_5] : memref<1x32xf32, #tpu.memory_space<vmem>>, vector<1x32xf32>
    %cst = arith.constant dense<0.000000e+00> : vector<8xf32>
    %4 = vector.multi_reduction <add>, %1, %cst [1] : vector<8x32xf32> to vector<8xf32>
    %5 = vector.shape_cast %4 : vector<8xf32> to vector<8x1xf32>
    %cst_6 = arith.constant 3.200000e+01 : f32
    %6 = vector.broadcast %cst_6 : f32 to vector<8x1xf32>
    %7 = arith.divf %5, %6 : vector<8x1xf32>
    %8 = vector.broadcast %7 : vector<8x1xf32> to vector<8x32xf32>
    %9 = arith.subf %1, %8 : vector<8x32xf32>
    %10 = vector.broadcast %7 : vector<8x1xf32> to vector<8x32xf32>
    %11 = arith.subf %1, %10 : vector<8x32xf32>
    %12 = arith.mulf %9, %11 : vector<8x32xf32>
    %cst_7 = arith.constant dense<0.000000e+00> : vector<8xf32>
    %13 = vector.multi_reduction <add>, %12, %cst_7 [1] : vector<8x32xf32> to vector<8xf32>
    %14 = vector.shape_cast %13 : vector<8xf32> to vector<8x1xf32>
    %cst_8 = arith.constant 3.200000e+01 : f32
    %15 = vector.broadcast %cst_8 : f32 to vector<8x1xf32>
    %16 = arith.divf %14, %15 : vector<8x1xf32>
    %17 = vector.broadcast %7 : vector<8x1xf32> to vector<8x32xf32>
    %18 = arith.subf %1, %17 : vector<8x32xf32>
    %cst_9 = arith.constant 9.99999997E-7 : f32
    %19 = vector.broadcast %cst_9 : f32 to vector<8x1xf32>
    %20 = arith.addf %16, %19 : vector<8x1xf32>
    %21 = math.rsqrt %20 : vector<8x1xf32>
    %22 = vector.broadcast %21 : vector<8x1xf32> to vector<8x32xf32>
    %23 = arith.mulf %18, %22 : vector<8x32xf32>
    %24 = vector.broadcast %2 : vector<1x32xf32> to vector<8x32xf32>
    %25 = arith.mulf %23, %24 : vector<8x32xf32>
    %26 = vector.broadcast %3 : vector<1x32xf32> to vector<8x32xf32>
    %27 = arith.addf %25, %26 : vector<8x32xf32>
    %28 = arith.truncf %27 : vector<8x32xf32> to vector<8x32xbf16>
    %c0_10 = arith.constant 0 : index
    %c0_11 = arith.constant 0 : index
    %29 = vector.load %arg4[%c0_10, %c0_11] : memref<32x96xbf16, #tpu.memory_space<vmem>>, vector<32x96xbf16>
    %cst_12 = arith.constant dense<0.000000e+00> : vector<8x96xf32>
    %30 = tpu.matmul %28, %29, %cst_12 {dimension_numbers = #tpu.dot_dimension_numbers<[1], [0], [0], [1], [0, 0, 1, 1], [], []>} : vector<8x32xbf16>, vector<32x96xbf16>, vector<8x96xf32> -> vector<8x96xf32>
    %c0_13 = arith.constant 0 : index
    %c0_14 = arith.constant 0 : index
    %31 = vector.load %arg5[%c0_13, %c0_14] : memref<1x96xf32, #tpu.memory_space<vmem>>, vector<1x96xf32>
    %32 = vector.broadcast %31 : vector<1x96xf32> to vector<8x96xf32>
    %33 = arith.addf %30, %32 : vector<8x96xf32>
    %34 = arith.truncf %33 : vector<8x96xf32> to vector<8x96xbf16>
    %35 = vector.extract_strided_slice %34 {offsets = [0, 0], sizes = [8, 32], strides = [1, 1]} : vector<8x96xbf16> to vector<8x32xbf16>
    %36 = vector.extract_strided_slice %34 {offsets = [0, 32], sizes = [8, 32], strides = [1, 1]} : vector<8x96xbf16> to vector<8x32xbf16>
    %37 = vector.extract_strided_slice %34 {offsets = [0, 64], sizes = [8, 32], strides = [1, 1]} : vector<8x96xbf16> to vector<8x32xbf16>
    %38 = vector.extract_strided_slice %35 {offsets = [0, 0], sizes = [8, 8], strides = [1, 1]} : vector<8x32xbf16> to vector<8x8xbf16>
    %39 = vector.extract_strided_slice %36 {offsets = [0, 0], sizes = [8, 8], strides = [1, 1]} : vector<8x32xbf16> to vector<8x8xbf16>
    %40 = vector.extract_strided_slice %37 {offsets = [0, 0], sizes = [8, 8], strides = [1, 1]} : vector<8x32xbf16> to vector<8x8xbf16>
    %cst_15 = arith.constant dense<0.000000e+00> : vector<8x8xf32>
    %41 = tpu.matmul %38, %39, %cst_15 {dimension_numbers = #tpu.dot_dimension_numbers<[1], [1], [0], [0], [0, 0, 1, 0], [], []>} : vector<8x8xbf16>, vector<8x8xbf16>, vector<8x8xf32> -> vector<8x8xf32>
    %cst_16 = arith.constant dense<0xFF800000> : vector<8xf32>
    %42 = vector.multi_reduction <maximumf>, %41, %cst_16 [1] : vector<8x8xf32> to vector<8xf32>
    %43 = vector.shape_cast %42 : vector<8xf32> to vector<8x1xf32>
    %44 = vector.broadcast %43 : vector<8x1xf32> to vector<8x8xf32>
    %45 = arith.subf %41, %44 : vector<8x8xf32>
    %46 = math.exp %45 : vector<8x8xf32>
    %cst_17 = arith.constant dense<0.000000e+00> : vector<8xf32>
    %47 = vector.multi_reduction <add>, %46, %cst_17 [1] : vector<8x8xf32> to vector<8xf32>
    %48 = vector.shape_cast %47 : vector<8xf32> to vector<8x1xf32>
    %49 = tpu.reciprocal %48 {approx = true} : vector<8x1xf32> -> vector<8x1xf32>
    %50 = vector.broadcast %49 : vector<8x1xf32> to vector<8x8xf32>
    %51 = arith.mulf %46, %50 : vector<8x8xf32>
    %52 = arith.truncf %51 : vector<8x8xf32> to vector<8x8xbf16>
    %cst_18 = arith.constant dense<0.000000e+00> : vector<8x8xf32>
    %53 = tpu.matmul %52, %40, %cst_18 {dimension_numbers = #tpu.dot_dimension_numbers<[1], [0], [0], [1], [0, 0, 1, 1], [], []>} : vector<8x8xbf16>, vector<8x8xbf16>, vector<8x8xf32> -> vector<8x8xf32>
    %c0_19 = arith.constant 0 : index
    %c0_20 = arith.constant 0 : index
    %54 = vector.load %arg15[%c0_19, %c0_20] : memref<8x32xf32, #tpu.memory_space<vmem>>, vector<8x8xf32>
    tpu.vector_store %arg15[%c0_19, %c0_20], %53 {strides = array<i32>} : memref<8x32xf32, #tpu.memory_space<vmem>>, vector<8x8xf32>,
    %55 = vector.extract_strided_slice %35 {offsets = [0, 8], sizes = [8, 8], strides = [1, 1]} : vector<8x32xbf16> to vector<8x8xbf16>
    %56 = vector.extract_strided_slice %36 {offsets = [0, 8], sizes = [8, 8], strides = [1, 1]} : vector<8x32xbf16> to vector<8x8xbf16>
    %57 = vector.extract_strided_slice %37 {offsets = [0, 8], sizes = [8, 8], strides = [1, 1]} : vector<8x32xbf16> to vector<8x8xbf16>
    %cst_21 = arith.constant dense<0.000000e+00> : vector<8x8xf32>
    %58 = tpu.matmul %55, %56, %cst_21 {dimension_numbers = #tpu.dot_dimension_numbers<[1], [1], [0], [0], [0, 0, 1, 0], [], []>} : vector<8x8xbf16>, vector<8x8xbf16>, vector<8x8xf32> -> vector<8x8xf32>
    %cst_22 = arith.constant dense<0xFF800000> : vector<8xf32>
    %59 = vector.multi_reduction <maximumf>, %58, %cst_22 [1] : vector<8x8xf32> to vector<8xf32>
    %60 = vector.shape_cast %59 : vector<8xf32> to vector<8x1xf32>
    %61 = vector.broadcast %60 : vector<8x1xf32> to vector<8x8xf32>
    %62 = arith.subf %58, %61 : vector<8x8xf32>
    %63 = math.exp %62 : vector<8x8xf32>
    %cst_23 = arith.constant dense<0.000000e+00> : vector<8xf32>
    %64 = vector.multi_reduction <add>, %63, %cst_23 [1] : vector<8x8xf32> to vector<8xf32>
    %65 = vector.shape_cast %64 : vector<8xf32> to vector<8x1xf32>
    %66 = tpu.reciprocal %65 {approx = true} : vector<8x1xf32> -> vector<8x1xf32>
    %67 = vector.broadcast %66 : vector<8x1xf32> to vector<8x8xf32>
    %68 = arith.mulf %63, %67 : vector<8x8xf32>
    %69 = arith.truncf %68 : vector<8x8xf32> to vector<8x8xbf16>
    %cst_24 = arith.constant dense<0.000000e+00> : vector<8x8xf32>
    %70 = tpu.matmul %69, %57, %cst_24 {dimension_numbers = #tpu.dot_dimension_numbers<[1], [0], [0], [1], [0, 0, 1, 1], [], []>} : vector<8x8xbf16>, vector<8x8xbf16>, vector<8x8xf32> -> vector<8x8xf32>
    %c0_25 = arith.constant 0 : index
    %c8 = arith.constant 8 : index
    %71 = vector.load %arg15[%c0_25, %c8] : memref<8x32xf32, #tpu.memory_space<vmem>>, vector<8x8xf32>
    tpu.vector_store %arg15[%c0_25, %c8], %70 {strides = array<i32>} : memref<8x32xf32, #tpu.memory_space<vmem>>, vector<8x8xf32>,
    %72 = vector.extract_strided_slice %35 {offsets = [0, 16], sizes = [8, 8], strides = [1, 1]} : vector<8x32xbf16> to vector<8x8xbf16>
    %73 = vector.extract_strided_slice %36 {offsets = [0, 16], sizes = [8, 8], strides = [1, 1]} : vector<8x32xbf16> to vector<8x8xbf16>
    %74 = vector.extract_strided_slice %37 {offsets = [0, 16], sizes = [8, 8], strides = [1, 1]} : vector<8x32xbf16> to vector<8x8xbf16>
    %cst_26 = arith.constant dense<0.000000e+00> : vector<8x8xf32>
    %75 = tpu.matmul %72, %73, %cst_26 {dimension_numbers = #tpu.dot_dimension_numbers<[1], [1], [0], [0], [0, 0, 1, 0], [], []>} : vector<8x8xbf16>, vector<8x8xbf16>, vector<8x8xf32> -> vector<8x8xf32>
    %cst_27 = arith.constant dense<0xFF800000> : vector<8xf32>
    %76 = vector.multi_reduction <maximumf>, %75, %cst_27 [1] : vector<8x8xf32> to vector<8xf32>
    %77 = vector.shape_cast %76 : vector<8xf32> to vector<8x1xf32>
    %78 = vector.broadcast %77 : vector<8x1xf32> to vector<8x8xf32>
    %79 = arith.subf %75, %78 : vector<8x8xf32>
    %80 = math.exp %79 : vector<8x8xf32>
    %cst_28 = arith.constant dense<0.000000e+00> : vector<8xf32>
    %81 = vector.multi_reduction <add>, %80, %cst_28 [1] : vector<8x8xf32> to vector<8xf32>
    %82 = vector.shape_cast %81 : vector<8xf32> to vector<8x1xf32>
    %83 = tpu.reciprocal %82 {approx = true} : vector<8x1xf32> -> vector<8x1xf32>
    %84 = vector.broadcast %83 : vector<8x1xf32> to vector<8x8xf32>
    %85 = arith.mulf %80, %84 : vector<8x8xf32>
    %86 = arith.truncf %85 : vector<8x8xf32> to vector<8x8xbf16>
    %cst_29 = arith.constant dense<0.000000e+00> : vector<8x8xf32>
    %87 = tpu.matmul %86, %74, %cst_29 {dimension_numbers = #tpu.dot_dimension_numbers<[1], [0], [0], [1], [0, 0, 1, 1], [], []>} : vector<8x8xbf16>, vector<8x8xbf16>, vector<8x8xf32> -> vector<8x8xf32>
    %c0_30 = arith.constant 0 : index
    %c16 = arith.constant 16 : index
    %88 = vector.load %arg15[%c0_30, %c16] : memref<8x32xf32, #tpu.memory_space<vmem>>, vector<8x8xf32>
    tpu.vector_store %arg15[%c0_30, %c16], %87 {strides = array<i32>} : memref<8x32xf32, #tpu.memory_space<vmem>>, vector<8x8xf32>,
    %89 = vector.extract_strided_slice %35 {offsets = [0, 24], sizes = [8, 8], strides = [1, 1]} : vector<8x32xbf16> to vector<8x8xbf16>
    %90 = vector.extract_strided_slice %36 {offsets = [0, 24], sizes = [8, 8], strides = [1, 1]} : vector<8x32xbf16> to vector<8x8xbf16>
    %91 = vector.extract_strided_slice %37 {offsets = [0, 24], sizes = [8, 8], strides = [1, 1]} : vector<8x32xbf16> to vector<8x8xbf16>
    %cst_31 = arith.constant dense<0.000000e+00> : vector<8x8xf32>
    %92 = tpu.matmul %89, %90, %cst_31 {dimension_numbers = #tpu.dot_dimension_numbers<[1], [1], [0], [0], [0, 0, 1, 0], [], []>} : vector<8x8xbf16>, vector<8x8xbf16>, vector<8x8xf32> -> vector<8x8xf32>
    %cst_32 = arith.constant dense<0xFF800000> : vector<8xf32>
    %93 = vector.multi_reduction <maximumf>, %92, %cst_32 [1] : vector<8x8xf32> to vector<8xf32>
    %94 = vector.shape_cast %93 : vector<8xf32> to vector<8x1xf32>
    %95 = vector.broadcast %94 : vector<8x1xf32> to vector<8x8xf32>
    %96 = arith.subf %92, %95 : vector<8x8xf32>
    %97 = math.exp %96 : vector<8x8xf32>
    %cst_33 = arith.constant dense<0.000000e+00> : vector<8xf32>
    %98 = vector.multi_reduction <add>, %97, %cst_33 [1] : vector<8x8xf32> to vector<8xf32>
    %99 = vector.shape_cast %98 : vector<8xf32> to vector<8x1xf32>
    %100 = tpu.reciprocal %99 {approx = true} : vector<8x1xf32> -> vector<8x1xf32>
    %101 = vector.broadcast %100 : vector<8x1xf32> to vector<8x8xf32>
    %102 = arith.mulf %97, %101 : vector<8x8xf32>
    %103 = arith.truncf %102 : vector<8x8xf32> to vector<8x8xbf16>
    %cst_34 = arith.constant dense<0.000000e+00> : vector<8x8xf32>
    %104 = tpu.matmul %103, %91, %cst_34 {dimension_numbers = #tpu.dot_dimension_numbers<[1], [0], [0], [1], [0, 0, 1, 1], [], []>} : vector<8x8xbf16>, vector<8x8xbf16>, vector<8x8xf32> -> vector<8x8xf32>
    %c0_35 = arith.constant 0 : index
    %c24 = arith.constant 24 : index
    %105 = vector.load %arg15[%c0_35, %c24] : memref<8x32xf32, #tpu.memory_space<vmem>>, vector<8x8xf32>
    tpu.vector_store %arg15[%c0_35, %c24], %104 {strides = array<i32>} : memref<8x32xf32, #tpu.memory_space<vmem>>, vector<8x8xf32>,
    %c0_36 = arith.constant 0 : index
    %c0_37 = arith.constant 0 : index
    %106 = vector.load %arg15[%c0_36, %c0_37] : memref<8x32xf32, #tpu.memory_space<vmem>>, vector<8x32xf32>
    %107 = arith.truncf %106 : vector<8x32xf32> to vector<8x32xbf16>
    %c0_38 = arith.constant 0 : index
    %c0_39 = arith.constant 0 : index
    %108 = vector.load %arg6[%c0_38, %c0_39] : memref<32x32xbf16, #tpu.memory_space<vmem>>, vector<32x32xbf16>
    %cst_40 = arith.constant dense<0.000000e+00> : vector<8x32xf32>
    %109 = tpu.matmul %107, %108, %cst_40 {dimension_numbers = #tpu.dot_dimension_numbers<[1], [0], [0], [1], [0, 0, 1, 1], [], []>} : vector<8x32xbf16>, vector<32x32xbf16>, vector<8x32xf32> -> vector<8x32xf32>
    %c0_41 = arith.constant 0 : index
    %c0_42 = arith.constant 0 : index
    %110 = vector.load %arg7[%c0_41, %c0_42] : memref<1x32xf32, #tpu.memory_space<vmem>>, vector<1x32xf32>
    %111 = vector.broadcast %110 : vector<1x32xf32> to vector<8x32xf32>
    %112 = arith.addf %109, %111 : vector<8x32xf32>
    %113 = arith.addf %1, %112 : vector<8x32xf32>
    %c0_43 = arith.constant 0 : index
    %c0_44 = arith.constant 0 : index
    %114 = vector.load %arg8[%c0_43, %c0_44] : memref<1x32xf32, #tpu.memory_space<vmem>>, vector<1x32xf32>
    %c0_45 = arith.constant 0 : index
    %c0_46 = arith.constant 0 : index
    %115 = vector.load %arg9[%c0_45, %c0_46] : memref<1x32xf32, #tpu.memory_space<vmem>>, vector<1x32xf32>
    %cst_47 = arith.constant dense<0.000000e+00> : vector<8xf32>
    %116 = vector.multi_reduction <add>, %113, %cst_47 [1] : vector<8x32xf32> to vector<8xf32>
    %117 = vector.shape_cast %116 : vector<8xf32> to vector<8x1xf32>
    %cst_48 = arith.constant 3.200000e+01 : f32
    %118 = vector.broadcast %cst_48 : f32 to vector<8x1xf32>
    %119 = arith.divf %117, %118 : vector<8x1xf32>
    %120 = vector.broadcast %119 : vector<8x1xf32> to vector<8x32xf32>
    %121 = arith.subf %113, %120 : vector<8x32xf32>
    %122 = vector.broadcast %119 : vector<8x1xf32> to vector<8x32xf32>
    %123 = arith.subf %113, %122 : vector<8x32xf32>
    %124 = arith.mulf %121, %123 : vector<8x32xf32>
    %cst_49 = arith.constant dense<0.000000e+00> : vector<8xf32>
    %125 = vector.multi_reduction <add>, %124, %cst_49 [1] : vector<8x32xf32> to vector<8xf32>
    %126 = vector.shape_cast %125 : vector<8xf32> to vector<8x1xf32>
    %cst_50 = arith.constant 3.200000e+01 : f32
    %127 = vector.broadcast %cst_50 : f32 to vector<8x1xf32>
    %128 = arith.divf %126, %127 : vector<8x1xf32>
    %129 = vector.broadcast %119 : vector<8x1xf32> to vector<8x32xf32>
    %130 = arith.subf %113, %129 : vector<8x32xf32>
    %cst_51 = arith.constant 9.99999997E-7 : f32
    %131 = vector.broadcast %cst_51 : f32 to vector<8x1xf32>
    %132 = arith.addf %128, %131 : vector<8x1xf32>
    %133 = math.rsqrt %132 : vector<8x1xf32>
    %134 = vector.broadcast %133 : vector<8x1xf32> to vector<8x32xf32>
    %135 = arith.mulf %130, %134 : vector<8x32xf32>
    %136 = vector.broadcast %114 : vector<1x32xf32> to vector<8x32xf32>
    %137 = arith.mulf %135, %136 : vector<8x32xf32>
    %138 = vector.broadcast %115 : vector<1x32xf32> to vector<8x32xf32>
    %139 = arith.addf %137, %138 : vector<8x32xf32>
    %140 = arith.truncf %139 : vector<8x32xf32> to vector<8x32xbf16>
    %c0_52 = arith.constant 0 : index
    %c0_53 = arith.constant 0 : index
    %141 = vector.load %arg10[%c0_52, %c0_53] : memref<32x64xbf16, #tpu.memory_space<vmem>>, vector<32x64xbf16>
    %cst_54 = arith.constant dense<0.000000e+00> : vector<8x64xf32>
    %142 = tpu.matmul %140, %141, %cst_54 {dimension_numbers = #tpu.dot_dimension_numbers<[1], [0], [0], [1], [0, 0, 1, 1], [], []>} : vector<8x32xbf16>, vector<32x64xbf16>, vector<8x64xf32> -> vector<8x64xf32>
    %c0_55 = arith.constant 0 : index
    %c0_56 = arith.constant 0 : index
    %143 = vector.load %arg11[%c0_55, %c0_56] : memref<1x64xf32, #tpu.memory_space<vmem>>, vector<1x64xf32>
    %144 = vector.broadcast %143 : vector<1x64xf32> to vector<8x64xf32>
    %145 = arith.addf %142, %144 : vector<8x64xf32>
    %cst_57 = arith.constant 5.000000e-01 : f32
    %146 = vector.broadcast %cst_57 : f32 to vector<8x64xf32>
    %147 = arith.mulf %146, %145 : vector<8x64xf32>
    %cst_58 = arith.constant 0.707106769 : f32
    %148 = vector.broadcast %cst_58 : f32 to vector<8x64xf32>
    %149 = arith.mulf %145, %148 : vector<8x64xf32>
    %150 = math.erf %149 : vector<8x64xf32>
    %cst_59 = arith.constant 1.000000e+00 : f32
    %151 = vector.broadcast %cst_59 : f32 to vector<8x64xf32>
    %152 = arith.addf %151, %150 : vector<8x64xf32>
    %153 = arith.mulf %147, %152 : vector<8x64xf32>
    %154 = arith.truncf %153 : vector<8x64xf32> to vector<8x64xbf16>
    %c0_60 = arith.constant 0 : index
    %c0_61 = arith.constant 0 : index
    %155 = vector.load %arg12[%c0_60, %c0_61] : memref<64x32xbf16, #tpu.memory_space<vmem>>, vector<64x32xbf16>
    %cst_62 = arith.constant dense<0.000000e+00> : vector<8x32xf32>
    %156 = tpu.matmul %154, %155, %cst_62 {dimension_numbers = #tpu.dot_dimension_numbers<[1], [0], [0], [1], [0, 0, 1, 1], [], []>} : vector<8x64xbf16>, vector<64x32xbf16>, vector<8x32xf32> -> vector<8x32xf32>
    %c0_63 = arith.constant 0 : index
    %c0_64 = arith.constant 0 : index
    %157 = vector.load %arg13[%c0_63, %c0_64] : memref<1x32xf32, #tpu.memory_space<vmem>>, vector<1x32xf32>
    %158 = vector.broadcast %157 : vector<1x32xf32> to vector<8x32xf32>
    %159 = arith.addf %156, %158 : vector<8x32xf32>
    %160 = arith.addf %113, %159 : vector<8x32xf32>
    %c0_65 = arith.constant 0 : index
    %c0_66 = arith.constant 0 : index
    %c0_67 = arith.constant 0 : index
    %161 = vector.load %arg14[%c0_65, %c0_66, %c0_67] : memref<1x8x32xf32, #tpu.memory_space<vmem>>, vector<1x8x32xf32>
    %162 = vector.shape_cast %161 : vector<1x8x32xf32> to vector<8x32xf32>
    %163 = vector.shape_cast %160 : vector<8x32xf32> to vector<1x8x32xf32>
    tpu.vector_store %arg14[%c0_65, %c0_66, %c0_67], %163 {strides = array<i32>} : memref<1x8x32xf32, #tpu.memory_space<vmem>>, vector<1x8x32xf32>,
    return
  }
  func.func @transform_0(%arg0: i32) -> (i32, i32, i32) {
    %c0_i32 = arith.constant 0 : i32
    %c0_i32_0 = arith.constant 0 : i32
    %c0_i32_1 = arith.constant 0 : i32
    return %arg0, %c0_i32, %c0_i32_0 : i32, i32, i32
  }
  func.func @transform_1(%arg0: i32) -> (i32, i32) {
    %c0_i32 = arith.constant 0 : i32
    %c0_i32_0 = arith.constant 0 : i32
    %c0_i32_1 = arith.constant 0 : i32
    return %c0_i32, %c0_i32_0 : i32, i32
  }
  func.func @transform_2(%arg0: i32) -> (i32, i32) {
    %c0_i32 = arith.constant 0 : i32
    %c0_i32_0 = arith.constant 0 : i32
    %c0_i32_1 = arith.constant 0 : i32
    return %c0_i32, %c0_i32_0 : i32, i32
  }
  func.func @transform_3(%arg0: i32) -> (i32, i32) {
    %c0_i32 = arith.constant 0 : i32
    %c0_i32_0 = arith.constant 0 : i32
    %c0_i32_1 = arith.constant 0 : i32
    return %c0_i32, %c0_i32_0 : i32, i32
  }
  func.func @transform_4(%arg0: i32) -> (i32, i32) {
    %c0_i32 = arith.constant 0 : i32
    %c0_i32_0 = arith.constant 0 : i32
    %c0_i32_1 = arith.constant 0 : i32
    return %c0_i32, %c0_i32_0 : i32, i32
  }
  func.func @transform_5(%arg0: i32) -> (i32, i32) {
    %c0_i32 = arith.constant 0 : i32
    %c0_i32_0 = arith.constant 0 : i32
    %c0_i32_1 = arith.constant 0 : i32
    return %c0_i32, %c0_i32_0 : i32, i32
  }
  func.func @transform_6(%arg0: i32) -> (i32, i32) {
    %c0_i32 = arith.constant 0 : i32
    %c0_i32_0 = arith.constant 0 : i32
    %c0_i32_1 = arith.constant 0 : i32
    return %c0_i32, %c0_i32_0 : i32, i32
  }
  func.func @transform_7(%arg0: i32) -> (i32, i32) {
    %c0_i32 = arith.constant 0 : i32
    %c0_i32_0 = arith.constant 0 : i32
    %c0_i32_1 = arith.constant 0 : i32
    return %c0_i32, %c0_i32_0 : i32, i32
  }
  func.func @transform_8(%arg0: i32) -> (i32, i32) {
    %c0_i32 = arith.constant 0 : i32
    %c0_i32_0 = arith.constant 0 : i32
    %c0_i32_1 = arith.constant 0 : i32
    return %c0_i32, %c0_i32_0 : i32, i32
  }
  func.func @transform_9(%arg0: i32) -> (i32, i32) {
    %c0_i32 = arith.constant 0 : i32
    %c0_i32_0 = arith.constant 0 : i32
    %c0_i32_1 = arith.constant 0 : i32
    return %c0_i32, %c0_i32_0 : i32, i32
  }
  func.func @transform_10(%arg0: i32) -> (i32, i32) {
    %c0_i32 = arith.constant 0 : i32
    %c0_i32_0 = arith.constant 0 : i32
    %c0_i32_1 = arith.constant 0 : i32
    return %c0_i32, %c0_i32_0 : i32, i32
  }
  func.func @transform_11(%arg0: i32) -> (i32, i32) {
    %c0_i32 = arith.constant 0 : i32
    %c0_i32_0 = arith.constant 0 : i32
    %c0_i32_1 = arith.constant 0 : i32
    return %c0_i32, %c0_i32_0 : i32, i32
  }
  func.func @transform_12(%arg0: i32) -> (i32, i32) {
    %c0_i32 = arith.constant 0 : i32
    %c0_i32_0 = arith.constant 0 : i32
    %c0_i32_1 = arith.constant 0 : i32
    return %c0_i32, %c0_i32_0 : i32, i32
  }
  func.func @transform_13(%arg0: i32) -> (i32, i32, i32) {
    %c0_i32 = arith.constant 0 : i32
    %c0_i32_0 = arith.constant 0 : i32
    %c0_i32_1 = arith.constant 0 : i32
    return %arg0, %c0_i32, %c0_i32_0 : i32, i32, i32
  }
}

module attributes {stable_mosaic.version = 11 : i64} {
  func.func @encoder_block_kernel(%arg0: i32, %arg1: memref<1x8x32xf32, #tpu.memory_space<vmem>>, %arg2: memref<1x32xf32, #tpu.memory_space<vmem>>, %arg3: memref<1x32xf32, #tpu.memory_space<vmem>>, %arg4: memref<32x96xbf16, #tpu.memory_space<vmem>>, %arg5: memref<1x96xf32, #tpu.memory_space<vmem>>, %arg6: memref<32x32xbf16, #tpu.memory_space<vmem>>, %arg7: memref<1x32xf32, #tpu.memory_space<vmem>>, %arg8: memref<1x32xf32, #tpu.memory_space<vmem>>, %arg9: memref<1x32xf32, #tpu.memory_space<vmem>>, %arg10: memref<32x64xbf16, #tpu.memory_space<vmem>>, %arg11: memref<1x64xf32, #tpu.memory_space<vmem>>, %arg12: memref<64x32xbf16, #tpu.memory_space<vmem>>, %arg13: memref<1x32xf32, #tpu.memory_space<vmem>>, %arg14: memref<1x8x32xf32, #tpu.memory_space<vmem>>, %arg15: memref<8x32xf32, #tpu.memory_space<vmem>>) attributes {dimension_semantics = [#tpu.dimension_semantics<parallel>], iteration_bounds = array<i64: 2>, scalar_prefetch = 0 : i64, scratch_operands = 1 : i64, tpu.core_type = #tpu.core_type<tc>, window_params = [{transform_indices = @transform_0, window_bounds = array<i64: 1, 8, 32>}, {pipeline_mode = #tpu.pipeline_mode<synchronous>, transform_indices = @transform_1, window_bounds = array<i64: 1, 32>}, {pipeline_mode = #tpu.pipeline_mode<synchronous>, transform_indices = @transform_2, window_bounds = array<i64: 1, 32>}, {pipeline_mode = #tpu.pipeline_mode<synchronous>, transform_indices = @transform_3, window_bounds = array<i64: 32, 96>}, {pipeline_mode = #tpu.pipeline_mode<synchronous>, transform_indices = @transform_4, window_bounds = array<i64: 1, 96>}, {pipeline_mode = #tpu.pipeline_mode<synchronous>, transform_indices = @transform_5, window_bounds = array<i64: 32, 32>}, {pipeline_mode = #tpu.pipeline_mode<synchronous>, transform_indices = @transform_6, window_bounds = array<i64: 1, 32>}, {pipeline_mode = #tpu.pipeline_mode<synchronous>, transform_indices = @transform_7, window_bounds = array<i64: 1, 32>}, {pipeline_mode = #tpu.pipeline_mode<synchronous>, transform_indices = @transform_8, window_bounds = array<i64: 1, 32>}, {pipeline_mode = #tpu.pipeline_mode<synchronous>, transform_indices = @transform_9, window_bounds = array<i64: 32, 64>}, {pipeline_mode = #tpu.pipeline_mode<synchronous>, transform_indices = @transform_10, window_bounds = array<i64: 1, 64>}, {pipeline_mode = #tpu.pipeline_mode<synchronous>, transform_indices = @transform_11, window_bounds = array<i64: 64, 32>}, {pipeline_mode = #tpu.pipeline_mode<synchronous>, transform_indices = @transform_12, window_bounds = array<i64: 1, 32>}, {transform_indices = @transform_13, window_bounds = array<i64: 1, 8, 32>}]} {
    %c0 = arith.constant 0 : index
    %c0_0 = arith.constant 0 : index
    %c0_1 = arith.constant 0 : index
    %0 = vector.load %arg1[%c0, %c0_0, %c0_1] : memref<1x8x32xf32, #tpu.memory_space<vmem>>, vector<1x8x32xf32>
    %1 = vector.shape_cast %0 : vector<1x8x32xf32> to vector<8x32xf32>
    %c0_2 = arith.constant 0 : index
    %c0_3 = arith.constant 0 : index
    %2 = vector.load %arg2[%c0_2, %c0_3] : memref<1x32xf32, #tpu.memory_space<vmem>>, vector<1x32xf32>
    %c0_4 = arith.constant 0 : index
    %c0_5 = arith.constant 0 : index
    %3 = vector.load %arg3[%c0_4, %c0_5] : memref<1x32xf32, #tpu.memory_space<vmem>>, vector<1x32xf32>
    %cst = arith.constant dense<0.000000e+00> : vector<8xf32>
    %4 = vector.multi_reduction <add>, %1, %cst [1] : vector<8x32xf32> to vector<8xf32>
    %5 = vector.shape_cast %4 : vector<8xf32> to vector<8x1xf32>
    %cst_6 = arith.constant 3.200000e+01 : f32
    %6 = vector.broadcast %cst_6 : f32 to vector<8x1xf32>
    %7 = arith.divf %5, %6 : vector<8x1xf32>
    %8 = vector.broadcast %7 : vector<8x1xf32> to vector<8x32xf32>
    %9 = arith.subf %1, %8 : vector<8x32xf32>
    %10 = vector.broadcast %7 : vector<8x1xf32> to vector<8x32xf32>
    %11 = arith.subf %1, %10 : vector<8x32xf32>
    %12 = arith.mulf %9, %11 : vector<8x32xf32>
    %cst_7 = arith.constant dense<0.000000e+00> : vector<8xf32>
    %13 = vector.multi_reduction <add>, %12, %cst_7 [1] : vector<8x32xf32> to vector<8xf32>
    %14 = vector.shape_cast %13 : vector<8xf32> to vector<8x1xf32>
    %cst_8 = arith.constant 3.200000e+01 : f32
    %15 = vector.broadcast %cst_8 : f32 to vector<8x1xf32>
    %16 = arith.divf %14, %15 : vector<8x1xf32>
    %17 = vector.broadcast %7 : vector<8x1xf32> to vector<8x32xf32>
    %18 = arith.subf %1, %17 : vector<8x32xf32>
    %cst_9 = arith.constant 9.99999997E-7 : f32
    %19 = vector.broadcast %cst_9 : f32 to vector<8x1xf32>
    %20 = arith.addf %16, %19 : vector<8x1xf32>
    %21 = math.rsqrt %20 : vector<8x1xf32>
    %22 = vector.broadcast %21 : vector<8x1xf32> to vector<8x32xf32>
    %23 = arith.mulf %18, %22 : vector<8x32xf32>
    %24 = vector.broadcast %2 : vector<1x32xf32> to vector<8x32xf32>
    %25 = arith.mulf %23, %24 : vector<8x32xf32>
    %26 = vector.broadcast %3 : vector<1x32xf32> to vector<8x32xf32>
    %27 = arith.addf %25, %26 : vector<8x32xf32>
    %28 = arith.truncf %27 : vector<8x32xf32> to vector<8x32xbf16>
    %c0_10 = arith.constant 0 : index
    %c0_11 = arith.constant 0 : index
    %29 = vector.load %arg4[%c0_10, %c0_11] : memref<32x96xbf16, #tpu.memory_space<vmem>>, vector<32x96xbf16>
    %cst_12 = arith.constant dense<0.000000e+00> : vector<8x96xf32>
    %30 = tpu.matmul %28, %29, %cst_12 {dimension_numbers = #tpu.dot_dimension_numbers<[1], [0], [0], [1], [0, 0, 1, 1], [], []>} : vector<8x32xbf16>, vector<32x96xbf16>, vector<8x96xf32> -> vector<8x96xf32>
    %c0_13 = arith.constant 0 : index
    %c0_14 = arith.constant 0 : index
    %31 = vector.load %arg5[%c0_13, %c0_14] : memref<1x96xf32, #tpu.memory_space<vmem>>, vector<1x96xf32>
    %32 = vector.broadcast %31 : vector<1x96xf32> to vector<8x96xf32>
    %33 = arith.addf %30, %32 : vector<8x96xf32>
    %34 = arith.truncf %33 : vector<8x96xf32> to vector<8x96xbf16>
    %35 = vector.extract_strided_slice %34 {offsets = [0, 0], sizes = [8, 32], strides = [1, 1]} : vector<8x96xbf16> to vector<8x32xbf16>
    %36 = vector.extract_strided_slice %34 {offsets = [0, 32], sizes = [8, 32], strides = [1, 1]} : vector<8x96xbf16> to vector<8x32xbf16>
    %37 = vector.extract_strided_slice %34 {offsets = [0, 64], sizes = [8, 32], strides = [1, 1]} : vector<8x96xbf16> to vector<8x32xbf16>
    %38 = vector.extract_strided_slice %35 {offsets = [0, 0], sizes = [8, 8], strides = [1, 1]} : vector<8x32xbf16> to vector<8x8xbf16>
    %39 = vector.extract_strided_slice %36 {offsets = [0, 0], sizes = [8, 8], strides = [1, 1]} : vector<8x32xbf16> to vector<8x8xbf16>
    %40 = vector.extract_strided_slice %37 {offsets = [0, 0], sizes = [8, 8], strides = [1, 1]} : vector<8x32xbf16> to vector<8x8xbf16>
    %cst_15 = arith.constant dense<0.000000e+00> : vector<8x8xf32>
    %41 = tpu.matmul %38, %39, %cst_15 {dimension_numbers = #tpu.dot_dimension_numbers<[1], [1], [0], [0], [0, 0, 1, 0], [], []>} : vector<8x8xbf16>, vector<8x8xbf16>, vector<8x8xf32> -> vector<8x8xf32>
    %cst_16 = arith.constant dense<0xFF800000> : vector<8xf32>
    %42 = vector.multi_reduction <maximumf>, %41, %cst_16 [1] : vector<8x8xf32> to vector<8xf32>
    %43 = vector.shape_cast %42 : vector<8xf32> to vector<8x1xf32>
    %44 = vector.broadcast %43 : vector<8x1xf32> to vector<8x8xf32>
    %45 = arith.subf %41, %44 : vector<8x8xf32>
    %46 = math.exp %45 : vector<8x8xf32>
    %cst_17 = arith.constant dense<0.000000e+00> : vector<8xf32>
    %47 = vector.multi_reduction <add>, %46, %cst_17 [1] : vector<8x8xf32> to vector<8xf32>
    %48 = vector.shape_cast %47 : vector<8xf32> to vector<8x1xf32>
    %49 = tpu.reciprocal %48 {approx = true} : vector<8x1xf32> -> vector<8x1xf32>
    %50 = vector.broadcast %49 : vector<8x1xf32> to vector<8x8xf32>
    %51 = arith.mulf %46, %50 : vector<8x8xf32>
    %52 = arith.truncf %51 : vector<8x8xf32> to vector<8x8xbf16>
    %cst_18 = arith.constant dense<0.000000e+00> : vector<8x8xf32>
    %53 = tpu.matmul %52, %40, %cst_18 {dimension_numbers = #tpu.dot_dimension_numbers<[1], [0], [0], [1], [0, 0, 1, 1], [], []>} : vector<8x8xbf16>, vector<8x8xbf16>, vector<8x8xf32> -> vector<8x8xf32>
    %c0_19 = arith.constant 0 : index
    %c0_20 = arith.constant 0 : index
    %54 = vector.load %arg15[%c0_19, %c0_20] : memref<8x32xf32, #tpu.memory_space<vmem>>, vector<8x8xf32>
    tpu.vector_store %arg15[%c0_19, %c0_20], %53 {strides = array<i32>} : memref<8x32xf32, #tpu.memory_space<vmem>>, vector<8x8xf32>,
    %55 = vector.extract_strided_slice %35 {offsets = [0, 8], sizes = [8, 8], strides = [1, 1]} : vector<8x32xbf16> to vector<8x8xbf16>
    %56 = vector.extract_strided_slice %36 {offsets = [0, 8], sizes = [8, 8], strides = [1, 1]} : vector<8x32xbf16> to vector<8x8xbf16>
    %57 = vector.extract_strided_slice %37 {offsets = [0, 8], sizes = [8, 8], strides = [1, 1]} : vector<8x32xbf16> to vector<8x8xbf16>
    %cst_21 = arith.constant dense<0.000000e+00> : vector<8x8xf32>
    %58 = tpu.matmul %55, %56, %cst_21 {dimension_numbers = #tpu.dot_dimension_numbers<[1], [1], [0], [0], [0, 0, 1, 0], [], []>} : vector<8x8xbf16>, vector<8x8xbf16>, vector<8x8xf32> -> vector<8x8xf32>
    %cst_22 = arith.constant dense<0xFF800000> : vector<8xf32>
    %59 = vector.multi_reduction <maximumf>, %58, %cst_22 [1] : vector<8x8xf32> to vector<8xf32>
    %60 = vector.shape_cast %59 : vector<8xf32> to vector<8x1xf32>
    %61 = vector.broadcast %60 : vector<8x1xf32> to vector<8x8xf32>
    %62 = arith.subf %58, %61 : vector<8x8xf32>
    %63 = math.exp %62 : vector<8x8xf32>
    %cst_23 = arith.constant dense<0.000000e+00> : vector<8xf32>
    %64 = vector.multi_reduction <add>, %63, %cst_23 [1] : vector<8x8xf32> to vector<8xf32>
    %65 = vector.shape_cast %64 : vector<8xf32> to vector<8x1xf32>
    %66 = tpu.reciprocal %65 {approx = true} : vector<8x1xf32> -> vector<8x1xf32>
    %67 = vector.broadcast %66 : vector<8x1xf32> to vector<8x8xf32>
    %68 = arith.mulf %63, %67 : vector<8x8xf32>
    %69 = arith.truncf %68 : vector<8x8xf32> to vector<8x8xbf16>
    %cst_24 = arith.constant dense<0.000000e+00> : vector<8x8xf32>
    %70 = tpu.matmul %69, %57, %cst_24 {dimension_numbers = #tpu.dot_dimension_numbers<[1], [0], [0], [1], [0, 0, 1, 1], [], []>} : vector<8x8xbf16>, vector<8x8xbf16>, vector<8x8xf32> -> vector<8x8xf32>
    %c0_25 = arith.constant 0 : index
    %c8 = arith.constant 8 : index
    %71 = vector.load %arg15[%c0_25, %c8] : memref<8x32xf32, #tpu.memory_space<vmem>>, vector<8x8xf32>
    tpu.vector_store %arg15[%c0_25, %c8], %70 {strides = array<i32>} : memref<8x32xf32, #tpu.memory_space<vmem>>, vector<8x8xf32>,
    %72 = vector.extract_strided_slice %35 {offsets = [0, 16], sizes = [8, 8], strides = [1, 1]} : vector<8x32xbf16> to vector<8x8xbf16>
    %73 = vector.extract_strided_slice %36 {offsets = [0, 16], sizes = [8, 8], strides = [1, 1]} : vector<8x32xbf16> to vector<8x8xbf16>
    %74 = vector.extract_strided_slice %37 {offsets = [0, 16], sizes = [8, 8], strides = [1, 1]} : vector<8x32xbf16> to vector<8x8xbf16>
    %cst_26 = arith.constant dense<0.000000e+00> : vector<8x8xf32>
    %75 = tpu.matmul %72, %73, %cst_26 {dimension_numbers = #tpu.dot_dimension_numbers<[1], [1], [0], [0], [0, 0, 1, 0], [], []>} : vector<8x8xbf16>, vector<8x8xbf16>, vector<8x8xf32> -> vector<8x8xf32>
    %cst_27 = arith.constant dense<0xFF800000> : vector<8xf32>
    %76 = vector.multi_reduction <maximumf>, %75, %cst_27 [1] : vector<8x8xf32> to vector<8xf32>
    %77 = vector.shape_cast %76 : vector<8xf32> to vector<8x1xf32>
    %78 = vector.broadcast %77 : vector<8x1xf32> to vector<8x8xf32>
    %79 = arith.subf %75, %78 : vector<8x8xf32>
    %80 = math.exp %79 : vector<8x8xf32>
    %cst_28 = arith.constant dense<0.000000e+00> : vector<8xf32>
    %81 = vector.multi_reduction <add>, %80, %cst_28 [1] : vector<8x8xf32> to vector<8xf32>
    %82 = vector.shape_cast %81 : vector<8xf32> to vector<8x1xf32>
    %83 = tpu.reciprocal %82 {approx = true} : vector<8x1xf32> -> vector<8x1xf32>
    %84 = vector.broadcast %83 : vector<8x1xf32> to vector<8x8xf32>
    %85 = arith.mulf %80, %84 : vector<8x8xf32>
    %86 = arith.truncf %85 : vector<8x8xf32> to vector<8x8xbf16>
    %cst_29 = arith.constant dense<0.000000e+00> : vector<8x8xf32>
    %87 = tpu.matmul %86, %74, %cst_29 {dimension_numbers = #tpu.dot_dimension_numbers<[1], [0], [0], [1], [0, 0, 1, 1], [], []>} : vector<8x8xbf16>, vector<8x8xbf16>, vector<8x8xf32> -> vector<8x8xf32>
    %c0_30 = arith.constant 0 : index
    %c16 = arith.constant 16 : index
    %88 = vector.load %arg15[%c0_30, %c16] : memref<8x32xf32, #tpu.memory_space<vmem>>, vector<8x8xf32>
    tpu.vector_store %arg15[%c0_30, %c16], %87 {strides = array<i32>} : memref<8x32xf32, #tpu.memory_space<vmem>>, vector<8x8xf32>,
    %89 = vector.extract_strided_slice %35 {offsets = [0, 24], sizes = [8, 8], strides = [1, 1]} : vector<8x32xbf16> to vector<8x8xbf16>
    %90 = vector.extract_strided_slice %36 {offsets = [0, 24], sizes = [8, 8], strides = [1, 1]} : vector<8x32xbf16> to vector<8x8xbf16>
    %91 = vector.extract_strided_slice %37 {offsets = [0, 24], sizes = [8, 8], strides = [1, 1]} : vector<8x32xbf16> to vector<8x8xbf16>
    %cst_31 = arith.constant dense<0.000000e+00> : vector<8x8xf32>
    %92 = tpu.matmul %89, %90, %cst_31 {dimension_numbers = #tpu.dot_dimension_numbers<[1], [1], [0], [0], [0, 0, 1, 0], [], []>} : vector<8x8xbf16>, vector<8x8xbf16>, vector<8x8xf32> -> vector<8x8xf32>
    %cst_32 = arith.constant dense<0xFF800000> : vector<8xf32>
    %93 = vector.multi_reduction <maximumf>, %92, %cst_32 [1] : vector<8x8xf32> to vector<8xf32>
    %94 = vector.shape_cast %93 : vector<8xf32> to vector<8x1xf32>
    %95 = vector.broadcast %94 : vector<8x1xf32> to vector<8x8xf32>
    %96 = arith.subf %92, %95 : vector<8x8xf32>
    %97 = math.exp %96 : vector<8x8xf32>
    %cst_33 = arith.constant dense<0.000000e+00> : vector<8xf32>
    %98 = vector.multi_reduction <add>, %97, %cst_33 [1] : vector<8x8xf32> to vector<8xf32>
    %99 = vector.shape_cast %98 : vector<8xf32> to vector<8x1xf32>
    %100 = tpu.reciprocal %99 {approx = true} : vector<8x1xf32> -> vector<8x1xf32>
    %101 = vector.broadcast %100 : vector<8x1xf32> to vector<8x8xf32>
    %102 = arith.mulf %97, %101 : vector<8x8xf32>
    %103 = arith.truncf %102 : vector<8x8xf32> to vector<8x8xbf16>
    %cst_34 = arith.constant dense<0.000000e+00> : vector<8x8xf32>
    %104 = tpu.matmul %103, %91, %cst_34 {dimension_numbers = #tpu.dot_dimension_numbers<[1], [0], [0], [1], [0, 0, 1, 1], [], []>} : vector<8x8xbf16>, vector<8x8xbf16>, vector<8x8xf32> -> vector<8x8xf32>
    %c0_35 = arith.constant 0 : index
    %c24 = arith.constant 24 : index
    %105 = vector.load %arg15[%c0_35, %c24] : memref<8x32xf32, #tpu.memory_space<vmem>>, vector<8x8xf32>
    tpu.vector_store %arg15[%c0_35, %c24], %104 {strides = array<i32>} : memref<8x32xf32, #tpu.memory_space<vmem>>, vector<8x8xf32>,
    %c0_36 = arith.constant 0 : index
    %c0_37 = arith.constant 0 : index
    %106 = vector.load %arg15[%c0_36, %c0_37] : memref<8x32xf32, #tpu.memory_space<vmem>>, vector<8x32xf32>
    %107 = arith.truncf %106 : vector<8x32xf32> to vector<8x32xbf16>
    %c0_38 = arith.constant 0 : index
    %c0_39 = arith.constant 0 : index
    %108 = vector.load %arg6[%c0_38, %c0_39] : memref<32x32xbf16, #tpu.memory_space<vmem>>, vector<32x32xbf16>
    %cst_40 = arith.constant dense<0.000000e+00> : vector<8x32xf32>
    %109 = tpu.matmul %107, %108, %cst_40 {dimension_numbers = #tpu.dot_dimension_numbers<[1], [0], [0], [1], [0, 0, 1, 1], [], []>} : vector<8x32xbf16>, vector<32x32xbf16>, vector<8x32xf32> -> vector<8x32xf32>
    %c0_41 = arith.constant 0 : index
    %c0_42 = arith.constant 0 : index
    %110 = vector.load %arg7[%c0_41, %c0_42] : memref<1x32xf32, #tpu.memory_space<vmem>>, vector<1x32xf32>
    %111 = vector.broadcast %110 : vector<1x32xf32> to vector<8x32xf32>
    %112 = arith.addf %109, %111 : vector<8x32xf32>
    %113 = arith.addf %1, %112 : vector<8x32xf32>
    %c0_43 = arith.constant 0 : index
    %c0_44 = arith.constant 0 : index
    %114 = vector.load %arg8[%c0_43, %c0_44] : memref<1x32xf32, #tpu.memory_space<vmem>>, vector<1x32xf32>
    %c0_45 = arith.constant 0 : index
    %c0_46 = arith.constant 0 : index
    %115 = vector.load %arg9[%c0_45, %c0_46] : memref<1x32xf32, #tpu.memory_space<vmem>>, vector<1x32xf32>
    %cst_47 = arith.constant dense<0.000000e+00> : vector<8xf32>
    %116 = vector.multi_reduction <add>, %113, %cst_47 [1] : vector<8x32xf32> to vector<8xf32>
    %117 = vector.shape_cast %116 : vector<8xf32> to vector<8x1xf32>
    %cst_48 = arith.constant 3.200000e+01 : f32
    %118 = vector.broadcast %cst_48 : f32 to vector<8x1xf32>
    %119 = arith.divf %117, %118 : vector<8x1xf32>
    %120 = vector.broadcast %119 : vector<8x1xf32> to vector<8x32xf32>
    %121 = arith.subf %113, %120 : vector<8x32xf32>
    %122 = vector.broadcast %119 : vector<8x1xf32> to vector<8x32xf32>
    %123 = arith.subf %113, %122 : vector<8x32xf32>
    %124 = arith.mulf %121, %123 : vector<8x32xf32>
    %cst_49 = arith.constant dense<0.000000e+00> : vector<8xf32>
    %125 = vector.multi_reduction <add>, %124, %cst_49 [1] : vector<8x32xf32> to vector<8xf32>
    %126 = vector.shape_cast %125 : vector<8xf32> to vector<8x1xf32>
    %cst_50 = arith.constant 3.200000e+01 : f32
    %127 = vector.broadcast %cst_50 : f32 to vector<8x1xf32>
    %128 = arith.divf %126, %127 : vector<8x1xf32>
    %129 = vector.broadcast %119 : vector<8x1xf32> to vector<8x32xf32>
    %130 = arith.subf %113, %129 : vector<8x32xf32>
    %cst_51 = arith.constant 9.99999997E-7 : f32
    %131 = vector.broadcast %cst_51 : f32 to vector<8x1xf32>
    %132 = arith.addf %128, %131 : vector<8x1xf32>
    %133 = math.rsqrt %132 : vector<8x1xf32>
    %134 = vector.broadcast %133 : vector<8x1xf32> to vector<8x32xf32>
    %135 = arith.mulf %130, %134 : vector<8x32xf32>
    %136 = vector.broadcast %114 : vector<1x32xf32> to vector<8x32xf32>
    %137 = arith.mulf %135, %136 : vector<8x32xf32>
    %138 = vector.broadcast %115 : vector<1x32xf32> to vector<8x32xf32>
    %139 = arith.addf %137, %138 : vector<8x32xf32>
    %140 = arith.truncf %139 : vector<8x32xf32> to vector<8x32xbf16>
    %c0_52 = arith.constant 0 : index
    %c0_53 = arith.constant 0 : index
    %141 = vector.load %arg10[%c0_52, %c0_53] : memref<32x64xbf16, #tpu.memory_space<vmem>>, vector<32x64xbf16>
    %cst_54 = arith.constant dense<0.000000e+00> : vector<8x64xf32>
    %142 = tpu.matmul %140, %141, %cst_54 {dimension_numbers = #tpu.dot_dimension_numbers<[1], [0], [0], [1], [0, 0, 1, 1], [], []>} : vector<8x32xbf16>, vector<32x64xbf16>, vector<8x64xf32> -> vector<8x64xf32>
    %c0_55 = arith.constant 0 : index
    %c0_56 = arith.constant 0 : index
    %143 = vector.load %arg11[%c0_55, %c0_56] : memref<1x64xf32, #tpu.memory_space<vmem>>, vector<1x64xf32>
    %144 = vector.broadcast %143 : vector<1x64xf32> to vector<8x64xf32>
    %145 = arith.addf %142, %144 : vector<8x64xf32>
    %cst_57 = arith.constant 5.000000e-01 : f32
    %146 = vector.broadcast %cst_57 : f32 to vector<8x64xf32>
    %147 = arith.mulf %146, %145 : vector<8x64xf32>
    %cst_58 = arith.constant 0.707106769 : f32
    %148 = vector.broadcast %cst_58 : f32 to vector<8x64xf32>
    %149 = arith.mulf %145, %148 : vector<8x64xf32>
    %150 = math.erf %149 : vector<8x64xf32>
    %cst_59 = arith.constant 1.000000e+00 : f32
    %151 = vector.broadcast %cst_59 : f32 to vector<8x64xf32>
    %152 = arith.addf %151, %150 : vector<8x64xf32>
    %153 = arith.mulf %147, %152 : vector<8x64xf32>
    %154 = arith.truncf %153 : vector<8x64xf32> to vector<8x64xbf16>
    %c0_60 = arith.constant 0 : index
    %c0_61 = arith.constant 0 : index
    %155 = vector.load %arg12[%c0_60, %c0_61] : memref<64x32xbf16, #tpu.memory_space<vmem>>, vector<64x32xbf16>
    %cst_62 = arith.constant dense<0.000000e+00> : vector<8x32xf32>
    %156 = tpu.matmul %154, %155, %cst_62 {dimension_numbers = #tpu.dot_dimension_numbers<[1], [0], [0], [1], [0, 0, 1, 1], [], []>} : vector<8x64xbf16>, vector<64x32xbf16>, vector<8x32xf32> -> vector<8x32xf32>
    %c0_63 = arith.constant 0 : index
    %c0_64 = arith.constant 0 : index
    %157 = vector.load %arg13[%c0_63, %c0_64] : memref<1x32xf32, #tpu.memory_space<vmem>>, vector<1x32xf32>
    %158 = vector.broadcast %157 : vector<1x32xf32> to vector<8x32xf32>
    %159 = arith.addf %156, %158 : vector<8x32xf32>
    %160 = arith.addf %113, %159 : vector<8x32xf32>
    %c0_65 = arith.constant 0 : index
    %c0_66 = arith.constant 0 : index
    %c0_67 = arith.constant 0 : index
    %161 = vector.load %arg14[%c0_65, %c0_66, %c0_67] : memref<1x8x32xf32, #tpu.memory_space<vmem>>, vector<1x8x32xf32>
    %162 = vector.shape_cast %161 : vector<1x8x32xf32> to vector<8x32xf32>
    %163 = vector.shape_cast %160 : vector<8x32xf32> to vector<1x8x32xf32>
    tpu.vector_store %arg14[%c0_65, %c0_66, %c0_67], %163 {strides = array<i32>} : memref<1x8x32xf32, #tpu.memory_space<vmem>>, vector<1x8x32xf32>,
    return
  }
  func.func @transform_0(%arg0: i32) -> (i32, i32, i32) {
    %c0_i32 = arith.constant 0 : i32
    %c0_i32_0 = arith.constant 0 : i32
    %c0_i32_1 = arith.constant 0 : i32
    return %arg0, %c0_i32, %c0_i32_0 : i32, i32, i32
  }
  func.func @transform_1(%arg0: i32) -> (i32, i32) {
    %c0_i32 = arith.constant 0 : i32
    %c0_i32_0 = arith.constant 0 : i32
    %c0_i32_1 = arith.constant 0 : i32
    return %c0_i32, %c0_i32_0 : i32, i32
  }
  func.func @transform_2(%arg0: i32) -> (i32, i32) {
    %c0_i32 = arith.constant 0 : i32
    %c0_i32_0 = arith.constant 0 : i32
    %c0_i32_1 = arith.constant 0 : i32
    return %c0_i32, %c0_i32_0 : i32, i32
  }
  func.func @transform_3(%arg0: i32) -> (i32, i32) {
    %c0_i32 = arith.constant 0 : i32
    %c0_i32_0 = arith.constant 0 : i32
    %c0_i32_1 = arith.constant 0 : i32
    return %c0_i32, %c0_i32_0 : i32, i32
  }
  func.func @transform_4(%arg0: i32) -> (i32, i32) {
    %c0_i32 = arith.constant 0 : i32
    %c0_i32_0 = arith.constant 0 : i32
    %c0_i32_1 = arith.constant 0 : i32
    return %c0_i32, %c0_i32_0 : i32, i32
  }
  func.func @transform_5(%arg0: i32) -> (i32, i32) {
    %c0_i32 = arith.constant 0 : i32
    %c0_i32_0 = arith.constant 0 : i32
    %c0_i32_1 = arith.constant 0 : i32
    return %c0_i32, %c0_i32_0 : i32, i32
  }
  func.func @transform_6(%arg0: i32) -> (i32, i32) {
    %c0_i32 = arith.constant 0 : i32
    %c0_i32_0 = arith.constant 0 : i32
    %c0_i32_1 = arith.constant 0 : i32
    return %c0_i32, %c0_i32_0 : i32, i32
  }
  func.func @transform_7(%arg0: i32) -> (i32, i32) {
    %c0_i32 = arith.constant 0 : i32
    %c0_i32_0 = arith.constant 0 : i32
    %c0_i32_1 = arith.constant 0 : i32
    return %c0_i32, %c0_i32_0 : i32, i32
  }
  func.func @transform_8(%arg0: i32) -> (i32, i32) {
    %c0_i32 = arith.constant 0 : i32
    %c0_i32_0 = arith.constant 0 : i32
    %c0_i32_1 = arith.constant 0 : i32
    return %c0_i32, %c0_i32_0 : i32, i32
  }
  func.func @transform_9(%arg0: i32) -> (i32, i32) {
    %c0_i32 = arith.constant 0 : i32
    %c0_i32_0 = arith.constant 0 : i32
    %c0_i32_1 = arith.constant 0 : i32
    return %c0_i32, %c0_i32_0 : i32, i32
  }
  func.func @transform_10(%arg0: i32) -> (i32, i32) {
    %c0_i32 = arith.constant 0 : i32
    %c0_i32_0 = arith.constant 0 : i32
    %c0_i32_1 = arith.constant 0 : i32
    return %c0_i32, %c0_i32_0 : i32, i32
  }
  func.func @transform_11(%arg0: i32) -> (i32, i32) {
    %c0_i32 = arith.constant 0 : i32
    %c0_i32_0 = arith.constant 0 : i32
    %c0_i32_1 = arith.constant 0 : i32
    return %c0_i32, %c0_i32_0 : i32, i32
  }
  func.func @transform_12(%arg0: i32) -> (i32, i32) {
    %c0_i32 = arith.constant 0 : i32
    %c0_i32_0 = arith.constant 0 : i32
    %c0_i32_1 = arith.constant 0 : i32
    return %c0_i32, %c0_i32_0 : i32, i32
  }
  func.func @transform_13(%arg0: i32) -> (i32, i32, i32) {
    %c0_i32 = arith.constant 0 : i32
    %c0_i32_0 = arith.constant 0 : i32
    %c0_i32_1 = arith.constant 0 : i32
    return %arg0, %c0_i32, %c0_i32_0 : i32, i32, i32
  }
}

</mosaic_0001>

<bundles_post_ra>
// kernel: tpu_custom_call.1
= control target key start
LH: loop header
LB: loop body
LE: loop exit
PB: predicated region body
PF: predicated region fallthrough
CT: control target
= control target key end

     0   :  { %s2349_s0 = inlined_call_operand.vmem [shape: f32[2,8,32], index: 0, kind: input, shape index: {}]   ;;  %s2350_s1 = inlined_call_operand.vmem [shape: f32[1,32], index: 1, kind: input, shape index: {}]   ;;  %s2351_s2 = inlined_call_operand.vmem [shape: f32[1,32], index: 2, kind: input, shape index: {}]   ;;  %s2352_s3 = inlined_call_operand.vmem [shape: bf16[32,96], index: 3, kind: input, shape index: {}]   ;;  %s2353_s4 = inlined_call_operand.hbm [shape: f32[1,96], index: 4, kind: input, shape index: {}]   ;;  %s2354_s5 = inlined_call_operand.vmem [shape: bf16[32,32], index: 5, kind: input, shape index: {}]   ;;  %s2355_s6 = inlined_call_operand.hbm [shape: f32[1,32], index: 6, kind: input, shape index: {}]   ;;  %s2356_s7 = inlined_call_operand.hbm [shape: f32[1,32], index: 7, kind: input, shape index: {}]   ;;  %s2357_s8 = inlined_call_operand.hbm [shape: f32[1,32], index: 8, kind: input, shape index: {}]   ;;  %s2358_s9 = inlined_call_operand.vmem [shape: bf16[32,64], index: 9, kind: input, shape index: {}]   ;;  %s2359_s10 = inlined_call_operand.vmem [shape: f32[1,64], index: 10, kind: input, shape index: {}]   ;;  %s2360_s11 = inlined_call_operand.vmem [shape: bf16[64,32], index: 11, kind: input, shape index: {}]   ;;  %s2361_s12 = inlined_call_operand.vmem [shape: f32[1,32], index: 12, kind: input, shape index: {}]   ;;  %s2362_s13 = inlined_call_operand.hbm [shape: f32[2,8,32], index: 13, kind: output, shape index: {}]  }
   0x1   :  { %2373 = sst [smem:[#allocation22_spill]] %s2362_s13 }
   0x2   :  { %18 = vsyncpa [#allocation4], 0 }
   0x3   :  { %19 = vsyncpa [#allocation7], 0 }
   0x4   :  { %20 = vsyncpa [#allocation10], 0 }
   0x5   :  { %21 = vsyncpa [#allocation5], 0 }
   0x6   :  { %23 = vsyncpa [#allocation5 + $0x1], 0  ;;  %s1987_s25 = smov 0   ;;  %s1989_s26 = smov 0  }
   0x7   :  { %s1991_s27 = smov 0   ;;  %s1993_s28 = smov 0  }
   0x8 LB: > { %2374 = sst [smem:[#allocation16_spill]] %s1882_s25  ;;  %s2008_s29 = sadd.s32 4294967295, %s1894_s28   ;;  %s1894_s28 = sphi %s1993_s28, %s2398_s28   ;;  %s1890_s27 = sphi %s1991_s27, %s2400_s27   ;;  %s1886_s26 = sphi %s1989_s26, %s2402_s26   ;;  %s1882_s25 = sphi %s1987_s25, %s2401_s25  }
   0x9   : > { %2375 = sst [smem:[#allocation17_spill]] %s1890_s27  ;;  %s1418_s30 = sadd.s32 4294967294, %s1894_s28  }
   0xa   : > { %2376 = sst [smem:[#allocation18_spill]] %s1894_s28  ;;  %s2012_s14 = sadd.s32 1, %s1894_s28  }
   0xb   : > { %2377 = sst [smem:[#allocation19_spill]] %s2012_s14  ;;  %s314_s15 = sadd.s32 1, %s1890_s27 }
   0xc   : > { %s311_s16 = ssub.s32 %s1894_s28, %s2012_s14  ;;  %p324_p0 = scmp.ne.s32.totalorder %s1890_s27, %s1886_s26 }
   0xd   : > { %p312_p1 = scmp.eq.s32.totalorder %s311_s16, 0  ;;  %p325_p2 = scmp.eq.s32.totalorder %s2008_s29, 1 }
   0xe   : > { %p330_p3 = scmp.ne.s32.totalorder %s1886_s26, %s1882_s25  ;;  %p331_p4 = scmp.eq.s32.totalorder %s1418_s30, 1 }
   0xf   : > { %s2023_s17 = scalar_select %p312_p1, %s1890_s27, %s314_s15  }
  0x10   : > { %p2025_p5 = por %p325_p2, %p324_p0  ;;  %p2029_p6 = por %p331_p4, %p330_p3 }
  0x11   : > { %2378 = sst [smem:[#allocation20_spill]] %s2023_s17  ;;  %p1419_p7 = scmp.ge.s32.totalorder %s1894_s28, 1 }
  0x12   : > { %s2379_s18 = scalar_select %p2025_p5, 1, 0 }
  0x13   : > { %s2380_s19 = scalar_select %p2029_p6, 1, 0 }
  0x14   : > { %p338_p8 = scmp.lt.s32.totalorder %s1894_s28, 3  ;;  %p2368_p9 = scmp.eq.s32.totalorder %s2008_s29, 0 }
  0x15   : > { %2381 = sst [smem:[#allocation21_spill]] %s2380_s19  ;;  %s1896_s21 = smov [#allocation6]  }
  0x16   : > { %p2036_p10 = pnand %p1419_p7, %p338_p8  ;;  %s374_s22 = sshll.u32 %s1896_s21, 4  ;;  %s375_s22 = int_to_ptr.vmem [resolvable:$true] %s374_s22 }
  0x17   : > { %s1897_s23 = smov [#allocation3]   ;;  %s1898_s15 = smov [#allocation8]  }
  0x18   : > { %s2382_s20 = scalar_select %p2036_p10, 1, 0 }
  0x19   : > { %p1598_p11 = pneg %p2036_p10  ;;  %s360_s24 = sshll.u32 %s1897_s23, 4  ;;  %s2048_s24 = int_to_ptr.vmem [resolvable:$true] %s360_s24 }
  0x1a   : > { %s385_s16 = sshll.u32 %s1898_s15, 4  ;;  %s1708_s21 = scalar_lea.hbm %s2355_s6, 16  ;;  %s2050_s16 = int_to_ptr.vmem [resolvable:$true] %s385_s16 }
  0x1b   : > { %p2044_p12 = pnand %p2368_p9, %p1598_p11  ;;  %p1709_p13 = scmp.ne.s32.totalorder %s2355_s6, %s1708_s21 }
  0x1c   : > { %p1715_p3 = scmp.lt.u32.totalorder %s1708_s21, %s2355_s6 }
  0x1d   : > { %p2060_p0 = pneg %p2044_p12 }
  0x1f   : > { %p1711_p1 = pnand %p2060_p0, %p1709_p13 }
  0x21   : > { %p1712_p2 = pneg %p1711_p1 }
  0x23   : > { %p1717_p4 = pnand %p1715_p3, %p1712_p2 }
  0x25   : > { %1720 = shalt.err (!%p1717_p4)
}
  0x26   : > { %s1721_s27 = scalar_lea.vmem %s375_s22, 16  ;;  %s1728_s14 = scalar_lea.vmem %s375_s22, 32 }
  0x27   : > { %p1722_p7 = scmp.ne.s32.totalorder %s375_s22, %s1721_s27  ;;  %p1729_p9 = scmp.lt.s32.totalorder %s375_s22, %s375_s22 }
  0x28   : > { %p1730_p6 = scmp.lt.s32.totalorder %s1728_s14, %s1721_s27 }
  0x29   : > { %p1724_p8 = pnand %p1722_p7, %p2060_p0 }
  0x2a   : > { %p1731_p5 = por %p1730_p6, %p1729_p9 }
  0x2b   : > { %p1725_p11 = pneg %p1724_p8 }
  0x2d   : > { %p1732_p10 = pnand %p1731_p5, %p1725_p11 }
  0x2f   : > { %1735 = shalt.err (!%p1732_p10)
}
  0x30   : > { %1604 = dma.hbm_to_vmem [thread:$0]  (!%p2044_p12), %s2355_s6, 16, %s375_s22, [#allocation7]  }
  0x31   : > { %s1736_s15 = scalar_lea.hbm %s2353_s4, 16 }
  0x32   : > { %p1737_p13 = scmp.ne.s32.totalorder %s2353_s4, %s1736_s15  ;;  %p1743_p5 = scmp.lt.u32.totalorder %s1736_s15, %s2353_s4 }
  0x34   : > { %p1739_p1 = pnand %p1737_p13, %p2060_p0 }
  0x36   : > { %p1740_p6 = pneg %p1739_p1 }
  0x38   : > { %p1745_p9 = pnand %p1743_p5, %p1740_p6 }
  0x3a   : > { %1748 = shalt.err (!%p1745_p9)
}
  0x3b   : > { %s1749_s22 = scalar_lea.vmem %s2048_s24, 16  ;;  %s1756_s13 = scalar_lea.vmem %s2048_s24, 32 }
  0x3c   : > { %p1750_p10 = scmp.ne.s32.totalorder %s2048_s24, %s1749_s22  ;;  %p1757_p4 = scmp.lt.s32.totalorder %s2048_s24, %s2048_s24 }
  0x3d   : > { %p1758_p7 = scmp.lt.s32.totalorder %s1756_s13, %s1749_s22 }
  0x3e   : > { %p1752_p2 = pnand %p1750_p10, %p2060_p0 }
  0x3f   : > { %p1759_p8 = por %p1758_p7, %p1757_p4 }
  0x40   : > { %p1753_p3 = pneg %p1752_p2 }
  0x42   : > { %p1760_p11 = pnand %p1759_p8, %p1753_p3 }
  0x44   : > { %1763 = shalt.err (!%p1760_p11)
}
  0x45   : > { %1601 = dma.hbm_to_vmem [thread:$0]  (!%p2044_p12), %s2353_s4, 16, %s2048_s24, [#allocation4]  }
  0x46   : > { %s1764_s21 = scalar_lea.hbm %s2356_s7, 16 }
  0x47   : > { %p1765_p13 = scmp.ne.s32.totalorder %s2356_s7, %s1764_s21  ;;  %p1771_p5 = scmp.lt.u32.totalorder %s1764_s21, %s2356_s7 }
  0x49   : > { %p1767_p1 = pnand %p1765_p13, %p2060_p0 }
  0x4b   : > { %p1768_p6 = pneg %p1767_p1 }
  0x4d   : > { %p1773_p9 = pnand %p1771_p5, %p1768_p6 }
  0x4f   : > { %1776 = shalt.err (!%p1773_p9)
}
  0x50   : > { %s1777_s24 = scalar_lea.vmem %s2050_s16, 16  ;;  %s1784_s13 = scalar_lea.vmem %s2050_s16, 32 }
  0x51   : > { %p1778_p10 = scmp.ne.s32.totalorder %s2050_s16, %s1777_s24  ;;  %p1785_p4 = scmp.lt.s32.totalorder %s2050_s16, %s2050_s16 }
  0x52   : > { %p1786_p7 = scmp.lt.s32.totalorder %s1784_s13, %s1777_s24 }
  0x53   : > { %p1780_p2 = pnand %p1778_p10, %p2060_p0 }
  0x54   : > { %p1787_p8 = por %p1786_p7, %p1785_p4 }
  0x55   : > { %p1781_p3 = pneg %p1780_p2 }
  0x57   : > { %p1788_p11 = pnand %p1787_p8, %p1781_p3 }
  0x59   : > { %1791 = shalt.err (!%p1788_p11)
}
  0x5a   : > { %1607 = dma.hbm_to_vmem [thread:$0]  (!%p2044_p12), %s2356_s7, 16, %s2050_s16, [#allocation7]  }
  0x5b   : > { %s1899_s19 = smov [#allocation9]   ;;  %s1792_s27 = scalar_lea.hbm %s2357_s8, 16 }
  0x5c   : > { %s396_s25 = sshll.u32 %s1899_s19, 4  ;;  %p1793_p13 = scmp.ne.s32.totalorder %s2357_s8, %s1792_s27  ;;  %s397_s25 = int_to_ptr.vmem [resolvable:$true] %s396_s25 }
  0x5d   : > { %p1799_p5 = scmp.lt.u32.totalorder %s1792_s27, %s2357_s8 }
  0x5e   : > { %p1795_p1 = pnand %p1793_p13, %p2060_p0 }
  0x60   : > { %p1796_p6 = pneg %p1795_p1 }
  0x62   : > { %p1801_p9 = pnand %p1799_p5, %p1796_p6 }
  0x64   : > { %1804 = shalt.err (!%p1801_p9)
}
  0x65   : > { %s1805_s16 = scalar_lea.vmem %s397_s25, 16  ;;  %s1812_s28 = scalar_lea.vmem %s397_s25, 32 }
  0x66   : > { %p1806_p10 = scmp.ne.s32.totalorder %s397_s25, %s1805_s16  ;;  %p1813_p4 = scmp.lt.s32.totalorder %s397_s25, %s397_s25 }
  0x67   : > { %p1814_p7 = scmp.lt.s32.totalorder %s1812_s28, %s1805_s16 }
  0x68   : > { %p1808_p2 = pnand %p1806_p10, %p2060_p0 }
  0x69   : > { %p1815_p8 = por %p1814_p7, %p1813_p4 }
  0x6a   : > { %p1809_p3 = pneg %p1808_p2 }
  0x6c   : > { %p1816_p11 = pnand %p1815_p8, %p1809_p3 }
  0x6e   : > { %1819 = shalt.err (!%p1816_p11)
}
  0x6f   : > { %1610 = dma.hbm_to_vmem [thread:$0]  (!%p2044_p12), %s2357_s8, 16, %s397_s25, [#allocation10]  }
  0x70   : > { %p2385_p13 = scmp.ne.s32.totalorder %s2382_s20, 0 }
  0x71   : > { %p2386_p1 = scmp.eq.s32.totalorder (!%p2385_p13), %s2008_s29, 0 }
  0x72   : > { %428 = sbr.rel (%p2385_p13) target bundleno = 2710 (0xa96), region = 72 }
  0x79   : > { %1865 = dma.done.wait (%p2386_p1), [#allocation4], 16   ;;  %p2387_p0 = pmov %p2386_p1 }
  0x7b   : > { %1867 = vsyncadd (%p2387_p0), [#allocation4], 4294967280  ;;  %p2388_p6 = pmov %p2387_p0 }
  0x7c   : > { %p2389_p5 = pmov %p2387_p0 }
  0x7d   : > { %1869 = dma.done.wait (%p2388_p6), [#allocation7], 32  }
  0x7e   : > { %1871 = vsyncadd (%p2389_p5), [#allocation7], 4294967264  ;;  %p2390_p9 = pmov %p2387_p0 }
  0x7f   : > { %p2391_p12 = pmov %p2387_p0 }
  0x80   : > { %1873 = dma.done.wait (%p2390_p9), [#allocation10], 16  }
  0x81   : > { %1875 = vsyncadd (%p2391_p12), [#allocation10], 4294967280  ;;  %p483_p10 = scmp.lt.s32.totalorder %s2008_s29, 1  ;;  %vm491_vm0 = vcmask 261120   ;;  %v1676_v7 = vld [vmem:[%s2352_s3] sm:$0xff]   ;;  %v1900_v8 = vmov 0.0  }
  0x82   : > { %1496 = vmatprep.subr.bf16.mxu0 %v1900_v8  ;;  %vm1901_vm1 = vmmov 0   ;;  %v1677_v9 = vld [vmem:[%s2352_s3 + $0x8] sm:$0xff]   ;;  %1504 = vmatprep.subr.bf16.mxu1 %v1900_v8  ;;  %v1432_v14 = vld [vmem:[%s2350_s1] ss:$0 sm:$0xff]  ;;  %s1902_s17 = smov 120   ;;  %s1903_s19 = smov 96  }
  0x83   : > { %s484_s20 = scalar_select %p483_p10, %s2008_s29, 1  ;;  %1500 = vmatprep.mubr.msk.bf16.mxu0 %vm1901_vm1, %v1900_v8  ;;  %1497 = vmatpush3.bf16.msra.mxu0 %v1676_v7  ;;  %v1433_v16 = vld [vmem:[%s2351_s2] ss:$0 sm:$0xff]  ;;  %v1434_v20 = vld [vmem:[#allocation3] ss:$0 sm:$0xff]  ;;  %vm591_vm2 = vcmask 64512  }
  0x84   : > { %1498 = vmatprep.subr.bf16.mxu0 %v1900_v8  ;;  %1506 = vmatprep.mubr.msk.bf16.mxu1 %vm1901_vm1, %v1900_v8  ;;  %s1906_s23 = smov 112   ;;  %s1907_s25 = smov 72   ;;  %vm655_vm3 = vcmask 1043456   ;;  %vm814_vm4 = vcmask 130112   ;;  %vm930_vm5 = vcmask 195712   ;;  %vm1046_vm6 = vcmask 261312  }
  0x85   : > { %s1431_s30 = sshll.u32 %s484_s20, 3  ;;  %s1904_s20 = smov 88   ;;  %vm1258_vm7 = vcmask 523264  }
  0x86   : > { %s486_s21 = scalar_lea.vmem %s2349_s0, %s1431_s30  ;;  %s1905_s30 = smov 80  }
  0x87   : > { %v2161_v0 = vld [vmem:[%s486_s21] sm:$0xff]  ;;  %1499 = vmatpush3.bf16.msra.mxu0 %v1677_v9  ;;  %s1908_s21 = smov 104   ;;  %s1909_s15 = smov 64  }
  0x88   : > { %v492_v1 = vsel %vm491_vm0, %v2161_v0, 0.0  ;;  %1510 = vmatprep.subr.bf16.mxu0 %v1900_v8  ;;  %s1910_s27 = smov 56   ;;  %s1911_s14 = smov 48  }
  0x89   : > { %493 = vadd.xlane.f32.xlu0 %v492_v1  ;;  %s1912_s22 = smov 40   ;;  %s1913_s24 = smov 8  }
  0x8a   : > { %p2393_p3 = scmp.ne.s32.totalorder %s2379_s18, 0  ;;  %s1916_s28 = smov [#allocation11]  }
 0x116   : > { %v494_v2 = vpop.xlane.xlu0 %493 }
 0x117   : > { %v496_v3 = vmul.f32 0.03125, %v494_v2 }
 0x119   : > { %v497_v4 = vsub.f32 %v2161_v0, %v496_v3 }
 0x11b   : > { %v498_v5 = vmul.f32 %v497_v4, %v497_v4 }
 0x11d   : > { %v499_v6 = vsel %vm491_vm0, %v498_v5, 0.0 }
 0x11e   : > { %500 = vadd.xlane.f32.xlu0 %v499_v6 }
 0x1ab   : > { %v501_v10 = vpop.xlane.xlu0 %500 }
 0x1ac   : > { %v502_v11 = vmul.f32 0.03125, %v501_v10 }
 0x1ae   : > { %v503_v12 = vadd.f32 1e-06, %v502_v11 }
 0x1b0   : > { %1686 = vrsqrt.f32 %v503_v12 }
 0x1ba   : > { %v1687_v13 = vpop.eup %1686 }
 0x1bb   : > { %v505_v15 = vmul.f32 %v1687_v13, %v497_v4 }
 0x1bd   : > { %v512_v17 = vmul.f32 %v1432_v14, %v505_v15 }
 0x1bf   : > { %v519_v18 = vadd.f32 %v1433_v16, %v512_v17 }
 0x1c1   : > { %v520_v19 = vpack.c.bf16 %v519_v18, %v519_v18 }
 0x1c3   : > { %1501 = vmatmul.mubr.msk.bf16.vlgmr.msra.gmra.mrb[0].mxu0 %vm491_vm0, %v520_v19 }
 0x1c4   : > { %1512 = vmatprep.mubr.msk.bf16.mxu0 %vm1901_vm1, %v1900_v8 }
 0x296   : > { %v581_v21 = vpop.f32.mrb[0].mxu0 }
 0x297   : > { %v582_v22 = vadd.f32 %v1434_v20, %v581_v21  ;;  %v1502_v23 = vpop.f32.mrb[1].mxu0 }
 0x298   : > { %v584_v24 = vpop.f32.mrb[2].mxu0 }
 0x299   : > { %v2190_v25 = vpack.c.bf16 %v582_v22, %v582_v22  ;;  %v1503_v26 = vpop.f32.mrb[3].mxu0 }
 0x29b   : > { %700 = vrot.lane.b32.xlu0 %v2190_v25, %s1902_s17  ;;  %589 = vrot.lane.b32.xlu1 %v2190_v25, %s1903_s19  ;;  %s1914_s19 = smov 16   ;;  %s1824_s17 = sshll.u32 %s1916_s28, 4  ;;  %s1825_s17 = int_to_ptr.vmem [resolvable:$false] %s1824_s17 }
 0x29f   : > { %702 = vrot.lane.b32.xlu1 %v2190_v25, %s1904_s20  ;;  %s1915_s20 = smov 24  }
 0x2a3   : > { %818 = vrot.lane.b32.xlu1 %v2190_v25, %s1905_s30 }
 0x2a7   : > { %816 = vrot.lane.b32.xlu1 %v2190_v25, %s1906_s23 }
 0x2ab   : > { %934 = vrot.lane.b32.xlu1 %v2190_v25, %s1907_s25 }
 0x2af   : > { %932 = vrot.lane.b32.xlu1 %v2190_v25, %s1908_s21  ;;  %s1463_s21 = sshll.u32 %s2008_s29, 7 }
 0x30d   : > { %v590_v27 = vpop.permute.xlu1 %589  ;;  %v701_v32 = vpop.permute.xlu0 %700 }
 0x30e   : > { %v596_v28 = vsel %vm591_vm2, %v590_v27, 0 }
 0x30f   : > { %1505 = vmatpush3.bf16.xpose.msra.mxu1 %v596_v28 }
 0x310   : > { %1516 = vmatprep.subr.bf16.mxu1 %v1900_v8 }
 0x311   : > { %v703_v29 = vpop.permute.xlu1 %702 }
 0x312   : > { %v708_v30 = vsel %vm591_vm2, %v703_v29, 0 }
 0x315   : > { %v819_v31 = vpop.permute.xlu1 %818 }
 0x316   : > { %1507 = vmatmul.mubr.msk.bf16.vlgmr.msra.gmra.mrb[0].mxu1 %vm591_vm2, %v2190_v25  ;;  %v824_v34 = vsel %vm591_vm2, %v819_v31, 0 }
 0x317   : > { %1517 = vmatpush3.bf16.xpose.msra.mxu1 %v708_v30  ;;  %1518 = vmatprep.mubr.msk.bf16.mxu1 %vm1901_vm1, %v1900_v8 }
 0x318   : > { %1528 = vmatprep.subr.bf16.mxu1 %v1900_v8 }
 0x319   : > { %v817_v33 = vpop.permute.xlu1 %816 }
 0x31d   : > { %v935_v35 = vpop.permute.xlu1 %934 }
 0x31e   : > { %1519 = vmatmul.mubr.msk.bf16.vlgmr.msra.gmra.mrb[4].mxu1 %vm591_vm2, %v701_v32  ;;  %v940_v36 = vsel %vm591_vm2, %v935_v35, 0 }
 0x31f   : > { %1529 = vmatpush3.bf16.xpose.msra.mxu1 %v824_v34  ;;  %1530 = vmatprep.mubr.msk.bf16.mxu1 %vm1901_vm1, %v1900_v8 }
 0x320   : > { %1540 = vmatprep.subr.bf16.mxu1 %v1900_v8 }
 0x321   : > { %v933_v37 = vpop.permute.xlu1 %932 }
 0x326   : > { %1531 = vmatmul.mubr.msk.bf16.vlgmr.msra.gmra.mrb[8].mxu1 %vm591_vm2, %v817_v33 }
 0x327   : > { %1541 = vmatpush3.bf16.xpose.msra.mxu1 %v940_v36  ;;  %1542 = vmatprep.mubr.msk.bf16.mxu1 %vm1901_vm1, %v1900_v8 }
 0x328   : > { %1552 = vmatprep.subr.bf16.mxu1 %v1900_v8 }
 0x32e   : > { %1543 = vmatmul.mubr.msk.bf16.vlgmr.msra.gmra.mrb[12].mxu1 %vm591_vm2, %v933_v37 }
 0x32f   : > { %1556 = vmatprep.mubr.msk.bf16.mxu1 %vm1901_vm1, %v1900_v8 }
 0x3e9   : > { %v632_v38 = vpop.f32.mrb[0].mxu1 }
 0x3ea   : > { %v1508_v39 = vpop.f32.mrb[1].mxu1  ;;  %v638_v40 = vsel %vm591_vm2, %v632_v38, -inf }
 0x3eb   : > { %639 = vmax.xlane.f32.xlu1 %v638_v40  ;;  %v635_v41 = vpop.f32.mrb[2].mxu1 }
 0x3ec   : > { %v1509_v42 = vpop.f32.mrb[3].mxu1 }
 0x3f1   : > { %v744_v43 = vpop.f32.mrb[4].mxu1 }
 0x3f2   : > { %v1520_v44 = vpop.f32.mrb[5].mxu1  ;;  %v750_v45 = vsel %vm591_vm2, %v744_v43, -inf }
 0x3f3   : > { %751 = vmax.xlane.f32.xlu0 %v750_v45  ;;  %v747_v46 = vpop.f32.mrb[6].mxu1 }
 0x3f4   : > { %v1521_v47 = vpop.f32.mrb[7].mxu1 }
 0x3f9   : > { %v860_v48 = vpop.f32.mrb[8].mxu1 }
 0x3fa   : > { %v1532_v49 = vpop.f32.mrb[9].mxu1  ;;  %v866_v50 = vsel %vm591_vm2, %v860_v48, -inf }
 0x3fb   : > { %867 = vmax.xlane.f32.xlu1 %v866_v50  ;;  %v863_v51 = vpop.f32.mrb[10].mxu1  ;;  %v1679_v49 = vld [vmem:[%s2354_s5 + $0x8] sm:$0xff]  }
 0x3fc   : > { %v1533_v52 = vpop.f32.mrb[11].mxu1 }
 0x401   : > { %v976_v53 = vpop.f32.mrb[12].mxu1 }
 0x402   : > { %v1544_v54 = vpop.f32.mrb[13].mxu1  ;;  %v982_v55 = vsel %vm591_vm2, %v976_v53, -inf }
 0x403   : > { %983 = vmax.xlane.f32.xlu0 %v982_v55  ;;  %v979_v56 = vpop.f32.mrb[14].mxu1 }
 0x404   : > { %v1545_v57 = vpop.f32.mrb[15].mxu1 }
 0x478   : > { %v640_v58 = vpop.xlane.xlu1 %639 }
 0x479   : > { %v641_v59 = vsub.f32 %v632_v38, %v640_v58 }
 0x47b   : > { %v642_v60 = vmul.f32 1.442695, %v641_v59 }
 0x47d   : > { %1688 = vpow2.f32 %v642_v60 }
 0x480   : > { %v752_v61 = vpop.xlane.xlu0 %751 }
 0x481   : > { %v753_v62 = vsub.f32 %v744_v43, %v752_v61 }
 0x483   : > { %v754_v63 = vmul.f32 1.442695, %v753_v62 }
 0x485   : > { %1690 = vpow2.f32 %v754_v63  ;;  %v1446_v63 = vld [vmem:[#allocation6] ss:$0 sm:$0xff] }
 0x487   : > { %v1689_v1 = vpop.eup %1688 }
 0x488   : > { %v644_v2 = vsel %vm591_vm2, %v1689_v1, 0.0  ;;  %v868_v11 = vpop.xlane.xlu1 %867 }
 0x489   : > { %645 = vadd.xlane.f32.xlu1 %v644_v2  ;;  %v869_v12 = vsub.f32 %v860_v48, %v868_v11  ;;  %v1678_v48 = vld [vmem:[%s2354_s5] sm:$0xff]  }
 0x48a   : > { %1553 = vmatpush3.bf16.msra.mxu1 %v1678_v48 }
 0x48b   : > { %v870_v13 = vmul.f32 1.442695, %v869_v12  ;;  %1554 = vmatprep.subr.bf16.mxu1 %v1900_v8 }
 0x48e   : > { %1555 = vmatpush3.bf16.msra.mxu1 %v1679_v49 }
 0x48f   : > { %v1691_v3 = vpop.eup %1690  ;;  %1568 = vmatprep.subr.bf16.mxu1 %v1900_v8 }
 0x490   : > { %v984_v4 = vpop.xlane.xlu0 %983  ;;  %v756_v5 = vsel %vm591_vm2, %v1691_v3, 0.0 }
 0x491   : > { %v985_v6 = vsub.f32 %v976_v53, %v984_v4  ;;  %757 = vadd.xlane.f32.xlu0 %v756_v5 }
 0x493   : > { %v986_v7 = vmul.f32 1.442695, %v985_v6 }
 0x495   : > { %1692 = vpow2.f32 %v986_v7 }
 0x496   : > { %1694 = vpow2.f32 %v870_v13 }
 0x49a   : > { %650 = vrot.lane.b32.xlu1 %v2190_v25, %s1909_s15 }
 0x49f   : > { %v1693_v9 = vpop.eup %1692 }
 0x4a0   : > { %v988_v10 = vsel %vm591_vm2, %v1693_v9, 0.0  ;;  %v1695_v14 = vpop.eup %1694 }
 0x4a1   : > { %989 = vadd.xlane.f32.xlu0 %v988_v10  ;;  %v872_v15 = vsel %vm591_vm2, %v1695_v14, 0.0 }
 0x4b7   : > { %762 = vrot.lane.b32.xlu0 %v2190_v25, %s1910_s27 }
 0x4be   : > { %873 = vadd.xlane.f32.xlu1 %v872_v15 }
 0x4cf   : > { %878 = vrot.lane.b32.xlu1 %v2190_v25, %s1911_s14 }
 0x4d3   : > { %994 = vrot.lane.b32.xlu1 %v2190_v25, %s1912_s22 }
 0x516   : > { %v646_v16 = vpop.xlane.xlu1 %645 }
 0x517   : > { %1696 = vrcp.f32 %v646_v16 }
 0x51a   : > { %v651_v17 = vpop.permute.xlu1 %650 }
 0x51b   : > { %v657_v18 = vsel %vm655_vm3, %v651_v17, 0 }
 0x51c   : > { %1511 = vmatpush3.bf16.msra.mxu0 %v657_v18 }
 0x51d   : > { %1522 = vmatprep.subr.bf16.mxu0 %v1900_v8 }
 0x51e   : > { %v758_v20 = vpop.xlane.xlu0 %757 }
 0x51f   : > { %1698 = vrcp.f32 %v758_v20 }
 0x521   : > { %v1697_v19 = vpop.eup %1696 }
 0x522   : > { %v648_v21 = vmul.f32 %v1697_v19, %v1689_v1  ;;  %v1450_v19 = vld [vmem:[#allocation8] ss:$0 sm:$0xff] }
 0x524   : > { %v649_v22 = vpack.c.bf16 %v648_v21, %v648_v21  ;;  %v1451_v21 = vld [vmem:[#allocation9] ss:$0 sm:$0xff] }
 0x526   : > { %1513 = vmatmul.mubr.msk.bf16.vlgmr.msra.gmra.mrb[4].mxu0 %vm591_vm2, %v649_v22 }
 0x527   : > { %1524 = vmatprep.mubr.msk.bf16.mxu0 %vm1901_vm1, %v1900_v8 }
 0x529   : > { %v1699_v23 = vpop.eup %1698 }
 0x52a   : > { %v760_v25 = vmul.f32 %v1699_v23, %v1691_v3 }
 0x52c   : > { %v761_v28 = vpack.c.bf16 %v760_v25, %v760_v25  ;;  %v1682_v25 = vld [vmem:[%s2360_s11] sm:$0xff]  }
 0x52e   : > { %v990_v24 = vpop.xlane.xlu0 %989 }
 0x532   : > { %v763_v26 = vpop.permute.xlu0 %762 }
 0x533   : > { %v768_v27 = vsel %vm655_vm3, %v763_v26, 0  ;;  %v1683_v26 = vld [vmem:[%s2360_s11 + $0x8] sm:$0xff]  }
 0x534   : > { %1523 = vmatpush3.bf16.msra.mxu0 %v768_v27  ;;  %v1684_v27 = vld [vmem:[%s2360_s11 + $0x10] sm:$0xff]  }
 0x535   : > { %1534 = vmatprep.subr.bf16.mxu0 %v1900_v8 }
 0x537   : > { %1525 = vmatmul.mubr.msk.bf16.vlgmr.msra.gmra.mrb[8].mxu0 %vm591_vm2, %v761_v28  ;;  %v1685_v28 = vld [vmem:[%s2360_s11 + $0x18] sm:$0xff]  }
 0x538   : > { %1536 = vmatprep.mubr.msk.bf16.mxu0 %vm1901_vm1, %v1900_v8 }
 0x54b   : > { %v874_v29 = vpop.xlane.xlu1 %873 }
 0x54c   : > { %1700 = vrcp.f32 %v874_v29  ;;  %v1452_v29 = vld [vmem:[%s2359_s10] ss:$0 sm:$0xff] }
 0x54d   : > { %1702 = vrcp.f32 %v990_v24 }
 0x54f   : > { %v879_v30 = vpop.permute.xlu1 %878 }
 0x550   : > { %v884_v31 = vsel %vm655_vm3, %v879_v30, 0 }
 0x551   : > { %1535 = vmatpush3.bf16.msra.mxu0 %v884_v31 }
 0x552   : > { %1546 = vmatprep.subr.bf16.mxu0 %v1900_v8 }
 0x553   : > { %v995_v34 = vpop.permute.xlu1 %994 }
 0x554   : > { %v1000_v37 = vsel %vm655_vm3, %v995_v34, 0 }
 0x556   : > { %v1701_v32 = vpop.eup %1700 }
 0x557   : > { %v876_v33 = vmul.f32 %v1701_v32, %v1695_v14  ;;  %v1703_v36 = vpop.eup %1702  ;;  %v1680_v14 = vld [vmem:[%s2358_s9] sm:$0xff]  }
 0x558   : > { %v992_v38 = vmul.f32 %v1703_v36, %v1693_v9 }
 0x559   : > { %v877_v35 = vpack.c.bf16 %v876_v33, %v876_v33 }
 0x55a   : > { %v993_v39 = vpack.c.bf16 %v992_v38, %v992_v38 }
 0x55b   : > { %1537 = vmatmul.mubr.msk.bf16.vlgmr.msra.gmra.mrb[12].mxu0 %vm591_vm2, %v877_v35 }
 0x55c   : > { %1547 = vmatpush3.bf16.msra.mxu0 %v1000_v37  ;;  %1548 = vmatprep.mubr.msk.bf16.mxu0 %vm1901_vm1, %v1900_v8 }
 0x55d   : > { %1560 = vmatprep.subr.bf16.mxu0 %v1900_v8 }
 0x563   : > { %1549 = vmatmul.mubr.msk.bf16.vlgmr.msra.gmra.mrb[16].mxu0 %vm591_vm2, %v993_v39 }
 0x564   : > { %1564 = vmatprep.mubr.msk.bf16.mxu0 %vm1901_vm1, %v1900_v8  ;;  %1561 = vmatpush3.bf16.msra.mxu0 %v1680_v14 }
 0x565   : > { %1562 = vmatprep.subr.bf16.mxu0 %v1900_v8 }
 0x5f9   : > { %v693_v40 = vpop.f32.mrb[4].mxu0 }
 0x5fa   : > { %699 = vst.msk [vmem:[#allocation2] sm:$0xff] %vm591_vm2, %v693_v40  ;;  %v1514_v41 = vpop.f32.mrb[5].mxu0  ;;  %v1456_v40 = vld [vmem:[%s2361_s12] ss:$0 sm:$0xff] }
 0x5fb   : > { %v696_v42 = vpop.f32.mrb[6].mxu0 }
 0x5fc   : > { %v1515_v43 = vpop.f32.mrb[7].mxu0 }
 0x60a   : > { %v804_v44 = vpop.f32.mrb[8].mxu0 }
 0x60b   : > { %811 = vrot.lane.b32.xlu0 %v804_v44, %s1913_s24  ;;  %v1526_v45 = vpop.f32.mrb[9].mxu0  ;;  %s2392_s24 = sld [smem:[#allocation22_spill]] }
 0x60c   : > { %v807_v46 = vpop.f32.mrb[10].mxu0 }
 0x60d   : > { %v1527_v47 = vpop.f32.mrb[11].mxu0 }
 0x611   : > { %s2306_s13 = scalar_lea.hbm %s2392_s24, %s1463_s21 }
 0x62e   : > { %v920_v50 = vpop.f32.mrb[12].mxu0 }
 0x62f   : > { %927 = vrot.lane.b32.xlu1 %v920_v50, %s1914_s19  ;;  %v1538_v51 = vpop.f32.mrb[13].mxu0  ;;  %s1826_s19 = scalar_lea.vmem %s1825_s17, 256 }
 0x630   : > { %v923_v52 = vpop.f32.mrb[14].mxu0 }
 0x631   : > { %v1539_v53 = vpop.f32.mrb[15].mxu0 }
 0x636   : > { %v1036_v54 = vpop.f32.mrb[16].mxu0 }
 0x637   : > { %1043 = vrot.lane.b32.xlu0 %v1036_v54, %s1915_s20  ;;  %v1550_v55 = vpop.f32.mrb[17].mxu0  ;;  %s480_s20 = sand.u32 1, %s1886_s26  }
 0x638   : > { %v1039_v56 = vpop.f32.mrb[18].mxu0  ;;  %s1430_s30 = sshll.u32 %s480_s20, 3  ;;  %s1305_s29 = scalar_lea.sflag [#allocation5], %s480_s20 }
 0x639   : > { %v1551_v57 = vpop.f32.mrb[19].mxu0  ;;  %s482_s15 = scalar_lea.vmem [#allocation11], %s1430_s30 }
 0x63a   : > { %s1318_s27 = sshll.u32 %s482_s15, 4  ;;  %s2308_s27 = int_to_ptr.vmem [resolvable:$true] %s1318_s27 }
 0x63b   : > { %s1820_s16 = scalar_lea.vmem %s2308_s27, 128  ;;  %p1827_p8 = scmp.lt.s32.totalorder %s2308_s27, %s1825_s17 }
 0x63c   : > { %p1821_p2 = scmp.ne.s32.totalorder %s2308_s27, %s1820_s16  ;;  %p1828_p11 = scmp.lt.s32.totalorder %s1826_s19, %s1820_s16 }
 0x63e   : > { %p1822_p4 = pnand %p1821_p2, %p2393_p3  ;;  %p1829_p13 = por %p1828_p11, %p1827_p8 }
 0x640   : > { %p1823_p7 = pneg %p1822_p4 }
 0x642   : > { %p1830_p1 = pnand %p1829_p13, %p1823_p7 }
 0x67d   : > { %v812_v58 = vpop.permute.xlu0 %811 }
 0x67e   : > { %815 = vst.msk [vmem:[#allocation2] sm:$0xff] %vm814_vm4, %v812_v58 }
 0x6a1   : > { %v928_v59 = vpop.permute.xlu1 %927 }
 0x6a2   : > { %931 = vst.msk [vmem:[#allocation2] sm:$0xff] %vm930_vm5, %v928_v59 }
 0x6a9   : > { %v1044_v60 = vpop.permute.xlu0 %1043 }
 0x6aa   : > { %1047 = vst.msk [vmem:[#allocation2] sm:$0xff] %vm1046_vm6, %v1044_v60 }
 0x6b1   : > { %v1048_v61 = vld [vmem:[#allocation2] sm:$0xff] }
 0x6b2   : > { %v1049_v62 = vpack.c.bf16 %v1048_v61, %v1048_v61 }
 0x6b4   : > { %1557 = vmatmul.mubr.msk.bf16.vlgmr.msra.gmra.mrb[16].mxu1 %vm491_vm0, %v1049_v62 }
 0x6b5   : > { %1576 = vmatprep.mubr.msk.bf16.mxu1 %vm1901_vm1, %v1900_v8  ;;  %1569 = vmatpush3.bf16.msra.mxu1 %v1682_v25 }
 0x6b6   : > { %1570 = vmatprep.subr.bf16.mxu1 %v1900_v8 }
 0x6b9   : > { %1571 = vmatpush3.bf16.msra.mxu1 %v1683_v26 }
 0x6ba   : > { %1572 = vmatprep.subr.bf16.mxu1 %v1900_v8 }
 0x6bd   : > { %1573 = vmatpush3.bf16.msra.mxu1 %v1684_v27 }
 0x6be   : > { %1574 = vmatprep.subr.bf16.mxu1 %v1900_v8 }
 0x6c1   : > { %1575 = vmatpush3.bf16.msra.mxu1 %v1685_v28 }
 0x787   : > { %v1110_v1 = vpop.f32.mrb[16].mxu1 }
 0x788   : > { %v1111_v2 = vadd.f32 %v1446_v63, %v1110_v1  ;;  %v1558_v3 = vpop.f32.mrb[17].mxu1 }
 0x789   : > { %v1113_v4 = vpop.f32.mrb[18].mxu1 }
 0x78a   : > { %v2265_v5 = vadd.f32 %v1111_v2, %v2161_v0  ;;  %v1559_v6 = vpop.f32.mrb[19].mxu1  ;;  %v1681_v0 = vld [vmem:[%s2358_s9 + $0x8] sm:$0xff]  }
 0x78b   : > { %1563 = vmatpush3.bf16.msra.mxu0 %v1681_v0 }
 0x78c   : > { %v1119_v7 = vsel %vm491_vm0, %v2265_v5, 0.0 }
 0x78d   : > { %1120 = vadd.xlane.f32.xlu1 %v1119_v7 }
 0x81a   : > { %v1121_v9 = vpop.xlane.xlu1 %1120 }
 0x81b   : > { %v1122_v10 = vmul.f32 0.03125, %v1121_v9 }
 0x81d   : > { %v1123_v11 = vsub.f32 %v2265_v5, %v1122_v10 }
 0x81f   : > { %v1124_v12 = vmul.f32 %v1123_v11, %v1123_v11 }
 0x821   : > { %v1125_v13 = vsel %vm491_vm0, %v1124_v12, 0.0 }
 0x822   : > { %1126 = vadd.xlane.f32.xlu0 %v1125_v13 }
 0x8af   : > { %v1127_v15 = vpop.xlane.xlu0 %1126 }
 0x8b0   : > { %v1128_v16 = vmul.f32 0.03125, %v1127_v15 }
 0x8b2   : > { %v1129_v17 = vadd.f32 1e-06, %v1128_v16 }
 0x8b4   : > { %1704 = vrsqrt.f32 %v1129_v17 }
 0x8be   : > { %v1705_v18 = vpop.eup %1704 }
 0x8bf   : > { %v1131_v20 = vmul.f32 %v1705_v18, %v1123_v11 }
 0x8c1   : > { %v1138_v22 = vmul.f32 %v1450_v19, %v1131_v20 }
 0x8c3   : > { %v1145_v23 = vadd.f32 %v1451_v21, %v1138_v22 }
 0x8c5   : > { %v1146_v24 = vpack.c.bf16 %v1145_v23, %v1145_v23 }
 0x8c7   : > { %1565 = vmatmul.mubr.msk.bf16.vlgmr.msra.gmra.mrb[20].mxu0 %vm491_vm0, %v1146_v24 }
 0x99a   : > { %v1207_v30 = vpop.f32.mrb[20].mxu0 }
 0x99b   : > { %v1208_v31 = vadd.f32 %v1452_v29, %v1207_v30  ;;  %v1566_v32 = vpop.f32.mrb[21].mxu0 }
 0x99c   : > { %v1210_v33 = vpop.f32.mrb[22].mxu0 }
 0x99d   : > { %v1214_v34 = vmul.f32 0.70710677, %v1208_v31  ;;  %v1567_v35 = vpop.f32.mrb[23].mxu0  ;;  %v1213_v8 = vmul.f32 0.5, %v1208_v31 }
 0x99f   : > { %1706 = verf.f32 %v1214_v34 }
 0x9a9   : > { %v1707_v36 = vpop.eup %1706 }
 0x9aa   : > { %v1216_v37 = vadd.f32 1.0, %v1707_v36 }
 0x9ac   : > { %v1217_v38 = vmul.f32 %v1216_v37, %v1213_v8 }
 0x9ae   : > { %v1218_v39 = vpack.c.bf16 %v1217_v38, %v1217_v38 }
 0x9b0   : > { %1577 = vmatmul.mubr.msk.bf16.vlgmr.msra.gmra.mrb[20].mxu1 %vm1258_vm7, %v1218_v39 }
 0xa83   : > { %v1296_v41 = vpop.f32.mrb[20].mxu1 }
 0xa84   : > { %v1297_v42 = vadd.f32 %v1456_v40, %v1296_v41  ;;  %v1578_v43 = vpop.f32.mrb[21].mxu1 }
 0xa85   : > { %v1299_v44 = vpop.f32.mrb[22].mxu1 }
 0xa86   : > { %v1302_v45 = vadd.f32 %v1297_v42, %v2265_v5  ;;  %v1579_v46 = vpop.f32.mrb[23].mxu1 }
 0xa88   : > { %1303 = vst.msk [vmem:[%s482_s15] sm:$0xff] %vm491_vm0, %v1302_v45 }
 0xa89   : > { %1833 = shalt.err (!%p1830_p1)
}
 0xa8a   : > { %s1834_s20 = scalar_lea.hbm %s2306_s13, 128  ;;  %s1838_s25 = scalar_lea.hbm %s2392_s24, 256 }
 0xa8b   : > { %p1835_p0 = scmp.ne.s32.totalorder %s2306_s13, %s1834_s20  ;;  %p1839_p9 = scmp.lt.u32.totalorder %s2306_s13, %s2392_s24 }
 0xa8c   : > { %p1840_p12 = scmp.lt.u32.totalorder %s1838_s25, %s1834_s20  ;;  %p1842_p2 = scmp.lt.u32.totalorder %s1834_s20, %s2306_s13 }
 0xa8d   : > { %p1836_p6 = pnand %p1835_p0, %p2393_p3 }
 0xa8e   : > { %p1841_p10 = por %p1840_p12, %p1839_p9 }
 0xa8f   : > { %p1837_p5 = pneg %p1836_p6 }
 0xa90   : > { %p1843_p4 = por %p1842_p2, %p1841_p10 }
 0xa92   : > { %p1844_p7 = pnand %p1843_p4, %p1837_p5 }
 0xa94   : > { %1847 = shalt.err (!%p1844_p7)
}
 0xa95   : > { %1596 = dma.vmem_to_hbm [thread:$0]  (%p2393_p3), %s2308_s27, 128, %s2306_s13, %s1305_s29  }
 0xa96 PF: > { %s2394_s14 = sld [smem:[#allocation18_spill]]  ;;  %s2395_s22 = sld [smem:[#allocation16_spill]] }
 0xa97   : > { %s2396_s16 = sld [smem:[#allocation21_spill]] }
 0xa9c   : > { %p1623_p8 = scmp.ge.s32.totalorder %s2394_s14, 2  ;;  %s1330_s28 = sand.u32 1, %s2395_s22  }
 0xa9d   : > { %p2397_p11 = scmp.ne.s32.totalorder %s2396_s16, 0  ;;  %s1331_s17 = scalar_lea.sflag [#allocation5], %s1330_s28 }
 0xa9f   : > { %p1612_p13 = pnand %p1623_p8, %p2397_p11 }
 0xaa1   : > { %1877 = dma.done.wait (!%p1612_p13), %s1331_s17, 128  }
 0xaa2   : > { %1879 = vsyncadd (!%p1612_p13), %s1331_s17, 4294967168  ;;  %s2398_s28 = sld [smem:[#allocation19_spill]]  ;;  %s2399_s19 = sld [smem:[#allocation17_spill]] }
 0xaa3   : > { %s2400_s27 = sld [smem:[#allocation20_spill]]  ;;  %s2401_s25 = smov %s1886_s26 }
 0xaa8   : > { %p26_p1 = scmp.ge.s32.totalorder %s2398_s28, 4   ;;  %s2402_s26 = smov %s2399_s19 }
 0xaaa   :  { %28 = sbr.rel (!%p26_p1) target bundleno = 8 (0x8), region = 124 }
 0xab1   :  { %1336 = vsyncpa [#allocation4], 1 }
 0xab2   :  { %1338 = vsyncpa [#allocation4 + $0x1], 1 }
 0xab3   :  { %1339 = vsyncpa [#allocation7], 1 }
 0xab4   :  { %1340 = vsyncpa [#allocation10], 1 }
 0xab5   :  { %1341 = vsyncpa [#allocation5], 1 }
 0xab6   :  { %1343 = vsyncpa [#allocation5 + $0x1], 1 }

// kernel: tpu_custom_call.1
= control target key start
LH: loop header
LB: loop body
LE: loop exit
PB: predicated region body
PF: predicated region fallthrough
CT: control target
= control target key end

     0   :  { %s2349_s0 = inlined_call_operand.vmem [shape: f32[2,8,32], index: 0, kind: input, shape index: {}]   ;;  %s2350_s1 = inlined_call_operand.vmem [shape: f32[1,32], index: 1, kind: input, shape index: {}]   ;;  %s2351_s2 = inlined_call_operand.vmem [shape: f32[1,32], index: 2, kind: input, shape index: {}]   ;;  %s2352_s3 = inlined_call_operand.vmem [shape: bf16[32,96], index: 3, kind: input, shape index: {}]   ;;  %s2353_s4 = inlined_call_operand.hbm [shape: f32[1,96], index: 4, kind: input, shape index: {}]   ;;  %s2354_s5 = inlined_call_operand.vmem [shape: bf16[32,32], index: 5, kind: input, shape index: {}]   ;;  %s2355_s6 = inlined_call_operand.hbm [shape: f32[1,32], index: 6, kind: input, shape index: {}]   ;;  %s2356_s7 = inlined_call_operand.hbm [shape: f32[1,32], index: 7, kind: input, shape index: {}]   ;;  %s2357_s8 = inlined_call_operand.hbm [shape: f32[1,32], index: 8, kind: input, shape index: {}]   ;;  %s2358_s9 = inlined_call_operand.vmem [shape: bf16[32,64], index: 9, kind: input, shape index: {}]   ;;  %s2359_s10 = inlined_call_operand.vmem [shape: f32[1,64], index: 10, kind: input, shape index: {}]   ;;  %s2360_s11 = inlined_call_operand.vmem [shape: bf16[64,32], index: 11, kind: input, shape index: {}]   ;;  %s2361_s12 = inlined_call_operand.vmem [shape: f32[1,32], index: 12, kind: input, shape index: {}]   ;;  %s2362_s13 = inlined_call_operand.hbm [shape: f32[2,8,32], index: 13, kind: output, shape index: {}]  }
   0x1   :  { %2373 = sst [smem:[#allocation22_spill]] %s2362_s13 }
   0x2   :  { %18 = vsyncpa [#allocation4], 0 }
   0x3   :  { %19 = vsyncpa [#allocation7], 0 }
   0x4   :  { %20 = vsyncpa [#allocation10], 0 }
   0x5   :  { %21 = vsyncpa [#allocation5], 0 }
   0x6   :  { %23 = vsyncpa [#allocation5 + $0x1], 0  ;;  %s1987_s25 = smov 0   ;;  %s1989_s26 = smov 0  }
   0x7   :  { %s1991_s27 = smov 0   ;;  %s1993_s28 = smov 0  }
   0x8 LB: > { %2374 = sst [smem:[#allocation16_spill]] %s1882_s25  ;;  %s2008_s29 = sadd.s32 4294967295, %s1894_s28   ;;  %s1894_s28 = sphi %s1993_s28, %s2398_s28   ;;  %s1890_s27 = sphi %s1991_s27, %s2400_s27   ;;  %s1886_s26 = sphi %s1989_s26, %s2402_s26   ;;  %s1882_s25 = sphi %s1987_s25, %s2401_s25  }
   0x9   : > { %2375 = sst [smem:[#allocation17_spill]] %s1890_s27  ;;  %s1418_s30 = sadd.s32 4294967294, %s1894_s28  }
   0xa   : > { %2376 = sst [smem:[#allocation18_spill]] %s1894_s28  ;;  %s2012_s14 = sadd.s32 1, %s1894_s28  }
   0xb   : > { %2377 = sst [smem:[#allocation19_spill]] %s2012_s14  ;;  %s314_s15 = sadd.s32 1, %s1890_s27 }
   0xc   : > { %s311_s16 = ssub.s32 %s1894_s28, %s2012_s14  ;;  %p324_p0 = scmp.ne.s32.totalorder %s1890_s27, %s1886_s26 }
   0xd   : > { %p312_p1 = scmp.eq.s32.totalorder %s311_s16, 0  ;;  %p325_p2 = scmp.eq.s32.totalorder %s2008_s29, 1 }
   0xe   : > { %p330_p3 = scmp.ne.s32.totalorder %s1886_s26, %s1882_s25  ;;  %p331_p4 = scmp.eq.s32.totalorder %s1418_s30, 1 }
   0xf   : > { %s2023_s17 = scalar_select %p312_p1, %s1890_s27, %s314_s15  }
  0x10   : > { %p2025_p5 = por %p325_p2, %p324_p0  ;;  %p2029_p6 = por %p331_p4, %p330_p3 }
  0x11   : > { %2378 = sst [smem:[#allocation20_spill]] %s2023_s17  ;;  %p1419_p7 = scmp.ge.s32.totalorder %s1894_s28, 1 }
  0x12   : > { %s2379_s18 = scalar_select %p2025_p5, 1, 0 }
  0x13   : > { %s2380_s19 = scalar_select %p2029_p6, 1, 0 }
  0x14   : > { %p338_p8 = scmp.lt.s32.totalorder %s1894_s28, 3  ;;  %p2368_p9 = scmp.eq.s32.totalorder %s2008_s29, 0 }
  0x15   : > { %2381 = sst [smem:[#allocation21_spill]] %s2380_s19  ;;  %s1896_s21 = smov [#allocation6]  }
  0x16   : > { %p2036_p10 = pnand %p1419_p7, %p338_p8  ;;  %s374_s22 = sshll.u32 %s1896_s21, 4  ;;  %s375_s22 = int_to_ptr.vmem [resolvable:$true] %s374_s22 }
  0x17   : > { %s1897_s23 = smov [#allocation3]   ;;  %s1898_s15 = smov [#allocation8]  }
  0x18   : > { %s2382_s20 = scalar_select %p2036_p10, 1, 0 }
  0x19   : > { %p1598_p11 = pneg %p2036_p10  ;;  %s360_s24 = sshll.u32 %s1897_s23, 4  ;;  %s2048_s24 = int_to_ptr.vmem [resolvable:$true] %s360_s24 }
  0x1a   : > { %s385_s16 = sshll.u32 %s1898_s15, 4  ;;  %s1708_s21 = scalar_lea.hbm %s2355_s6, 16  ;;  %s2050_s16 = int_to_ptr.vmem [resolvable:$true] %s385_s16 }
  0x1b   : > { %p2044_p12 = pnand %p2368_p9, %p1598_p11  ;;  %p1709_p13 = scmp.ne.s32.totalorder %s2355_s6, %s1708_s21 }
  0x1c   : > { %p1715_p3 = scmp.lt.u32.totalorder %s1708_s21, %s2355_s6 }
  0x1d   : > { %p2060_p0 = pneg %p2044_p12 }
  0x1f   : > { %p1711_p1 = pnand %p2060_p0, %p1709_p13 }
  0x21   : > { %p1712_p2 = pneg %p1711_p1 }
  0x23   : > { %p1717_p4 = pnand %p1715_p3, %p1712_p2 }
  0x25   : > { %1720 = shalt.err (!%p1717_p4)
}
  0x26   : > { %s1721_s27 = scalar_lea.vmem %s375_s22, 16  ;;  %s1728_s14 = scalar_lea.vmem %s375_s22, 32 }
  0x27   : > { %p1722_p7 = scmp.ne.s32.totalorder %s375_s22, %s1721_s27  ;;  %p1729_p9 = scmp.lt.s32.totalorder %s375_s22, %s375_s22 }
  0x28   : > { %p1730_p6 = scmp.lt.s32.totalorder %s1728_s14, %s1721_s27 }
  0x29   : > { %p1724_p8 = pnand %p1722_p7, %p2060_p0 }
  0x2a   : > { %p1731_p5 = por %p1730_p6, %p1729_p9 }
  0x2b   : > { %p1725_p11 = pneg %p1724_p8 }
  0x2d   : > { %p1732_p10 = pnand %p1731_p5, %p1725_p11 }
  0x2f   : > { %1735 = shalt.err (!%p1732_p10)
}
  0x30   : > { %1604 = dma.hbm_to_vmem [thread:$0]  (!%p2044_p12), %s2355_s6, 16, %s375_s22, [#allocation7]  }
  0x31   : > { %s1736_s15 = scalar_lea.hbm %s2353_s4, 16 }
  0x32   : > { %p1737_p13 = scmp.ne.s32.totalorder %s2353_s4, %s1736_s15  ;;  %p1743_p5 = scmp.lt.u32.totalorder %s1736_s15, %s2353_s4 }
  0x34   : > { %p1739_p1 = pnand %p1737_p13, %p2060_p0 }
  0x36   : > { %p1740_p6 = pneg %p1739_p1 }
  0x38   : > { %p1745_p9 = pnand %p1743_p5, %p1740_p6 }
  0x3a   : > { %1748 = shalt.err (!%p1745_p9)
}
  0x3b   : > { %s1749_s22 = scalar_lea.vmem %s2048_s24, 16  ;;  %s1756_s13 = scalar_lea.vmem %s2048_s24, 32 }
  0x3c   : > { %p1750_p10 = scmp.ne.s32.totalorder %s2048_s24, %s1749_s22  ;;  %p1757_p4 = scmp.lt.s32.totalorder %s2048_s24, %s2048_s24 }
  0x3d   : > { %p1758_p7 = scmp.lt.s32.totalorder %s1756_s13, %s1749_s22 }
  0x3e   : > { %p1752_p2 = pnand %p1750_p10, %p2060_p0 }
  0x3f   : > { %p1759_p8 = por %p1758_p7, %p1757_p4 }
  0x40   : > { %p1753_p3 = pneg %p1752_p2 }
  0x42   : > { %p1760_p11 = pnand %p1759_p8, %p1753_p3 }
  0x44   : > { %1763 = shalt.err (!%p1760_p11)
}
  0x45   : > { %1601 = dma.hbm_to_vmem [thread:$0]  (!%p2044_p12), %s2353_s4, 16, %s2048_s24, [#allocation4]  }
  0x46   : > { %s1764_s21 = scalar_lea.hbm %s2356_s7, 16 }
  0x47   : > { %p1765_p13 = scmp.ne.s32.totalorder %s2356_s7, %s1764_s21  ;;  %p1771_p5 = scmp.lt.u32.totalorder %s1764_s21, %s2356_s7 }
  0x49   : > { %p1767_p1 = pnand %p1765_p13, %p2060_p0 }
  0x4b   : > { %p1768_p6 = pneg %p1767_p1 }
  0x4d   : > { %p1773_p9 = pnand %p1771_p5, %p1768_p6 }
  0x4f   : > { %1776 = shalt.err (!%p1773_p9)
}
  0x50   : > { %s1777_s24 = scalar_lea.vmem %s2050_s16, 16  ;;  %s1784_s13 = scalar_lea.vmem %s2050_s16, 32 }
  0x51   : > { %p1778_p10 = scmp.ne.s32.totalorder %s2050_s16, %s1777_s24  ;;  %p1785_p4 = scmp.lt.s32.totalorder %s2050_s16, %s2050_s16 }
  0x52   : > { %p1786_p7 = scmp.lt.s32.totalorder %s1784_s13, %s1777_s24 }
  0x53   : > { %p1780_p2 = pnand %p1778_p10, %p2060_p0 }
  0x54   : > { %p1787_p8 = por %p1786_p7, %p1785_p4 }
  0x55   : > { %p1781_p3 = pneg %p1780_p2 }
  0x57   : > { %p1788_p11 = pnand %p1787_p8, %p1781_p3 }
  0x59   : > { %1791 = shalt.err (!%p1788_p11)
}
  0x5a   : > { %1607 = dma.hbm_to_vmem [thread:$0]  (!%p2044_p12), %s2356_s7, 16, %s2050_s16, [#allocation7]  }
  0x5b   : > { %s1899_s19 = smov [#allocation9]   ;;  %s1792_s27 = scalar_lea.hbm %s2357_s8, 16 }
  0x5c   : > { %s396_s25 = sshll.u32 %s1899_s19, 4  ;;  %p1793_p13 = scmp.ne.s32.totalorder %s2357_s8, %s1792_s27  ;;  %s397_s25 = int_to_ptr.vmem [resolvable:$true] %s396_s25 }
  0x5d   : > { %p1799_p5 = scmp.lt.u32.totalorder %s1792_s27, %s2357_s8 }
  0x5e   : > { %p1795_p1 = pnand %p1793_p13, %p2060_p0 }
  0x60   : > { %p1796_p6 = pneg %p1795_p1 }
  0x62   : > { %p1801_p9 = pnand %p1799_p5, %p1796_p6 }
  0x64   : > { %1804 = shalt.err (!%p1801_p9)
}
  0x65   : > { %s1805_s16 = scalar_lea.vmem %s397_s25, 16  ;;  %s1812_s28 = scalar_lea.vmem %s397_s25, 32 }
  0x66   : > { %p1806_p10 = scmp.ne.s32.totalorder %s397_s25, %s1805_s16  ;;  %p1813_p4 = scmp.lt.s32.totalorder %s397_s25, %s397_s25 }
  0x67   : > { %p1814_p7 = scmp.lt.s32.totalorder %s1812_s28, %s1805_s16 }
  0x68   : > { %p1808_p2 = pnand %p1806_p10, %p2060_p0 }
  0x69   : > { %p1815_p8 = por %p1814_p7, %p1813_p4 }
  0x6a   : > { %p1809_p3 = pneg %p1808_p2 }
  0x6c   : > { %p1816_p11 = pnand %p1815_p8, %p1809_p3 }
  0x6e   : > { %1819 = shalt.err (!%p1816_p11)
}
  0x6f   : > { %1610 = dma.hbm_to_vmem [thread:$0]  (!%p2044_p12), %s2357_s8, 16, %s397_s25, [#allocation10]  }
  0x70   : > { %p2385_p13 = scmp.ne.s32.totalorder %s2382_s20, 0 }
  0x71   : > { %p2386_p1 = scmp.eq.s32.totalorder (!%p2385_p13), %s2008_s29, 0 }
  0x72   : > { %428 = sbr.rel (%p2385_p13) target bundleno = 2710 (0xa96), region = 72 }
  0x79   : > { %1865 = dma.done.wait (%p2386_p1), [#allocation4], 16   ;;  %p2387_p0 = pmov %p2386_p1 }
  0x7b   : > { %1867 = vsyncadd (%p2387_p0), [#allocation4], 4294967280  ;;  %p2388_p6 = pmov %p2387_p0 }
  0x7c   : > { %p2389_p5 = pmov %p2387_p0 }
  0x7d   : > { %1869 = dma.done.wait (%p2388_p6), [#allocation7], 32  }
  0x7e   : > { %1871 = vsyncadd (%p2389_p5), [#allocation7], 4294967264  ;;  %p2390_p9 = pmov %p2387_p0 }
  0x7f   : > { %p2391_p12 = pmov %p2387_p0 }
  0x80   : > { %1873 = dma.done.wait (%p2390_p9), [#allocation10], 16  }
  0x81   : > { %1875 = vsyncadd (%p2391_p12), [#allocation10], 4294967280  ;;  %p483_p10 = scmp.lt.s32.totalorder %s2008_s29, 1  ;;  %vm491_vm0 = vcmask 261120   ;;  %v1676_v7 = vld [vmem:[%s2352_s3] sm:$0xff]   ;;  %v1900_v8 = vmov 0.0  }
  0x82   : > { %1496 = vmatprep.subr.bf16.mxu0 %v1900_v8  ;;  %vm1901_vm1 = vmmov 0   ;;  %v1677_v9 = vld [vmem:[%s2352_s3 + $0x8] sm:$0xff]   ;;  %1504 = vmatprep.subr.bf16.mxu1 %v1900_v8  ;;  %v1432_v14 = vld [vmem:[%s2350_s1] ss:$0 sm:$0xff]  ;;  %s1902_s17 = smov 120   ;;  %s1903_s19 = smov 96  }
  0x83   : > { %s484_s20 = scalar_select %p483_p10, %s2008_s29, 1  ;;  %1500 = vmatprep.mubr.msk.bf16.mxu0 %vm1901_vm1, %v1900_v8  ;;  %1497 = vmatpush3.bf16.msra.mxu0 %v1676_v7  ;;  %v1433_v16 = vld [vmem:[%s2351_s2] ss:$0 sm:$0xff]  ;;  %v1434_v20 = vld [vmem:[#allocation3] ss:$0 sm:$0xff]  ;;  %vm591_vm2 = vcmask 64512  }
  0x84   : > { %1498 = vmatprep.subr.bf16.mxu0 %v1900_v8  ;;  %1506 = vmatprep.mubr.msk.bf16.mxu1 %vm1901_vm1, %v1900_v8  ;;  %s1906_s23 = smov 112   ;;  %s1907_s25 = smov 72   ;;  %vm655_vm3 = vcmask 1043456   ;;  %vm814_vm4 = vcmask 130112   ;;  %vm930_vm5 = vcmask 195712   ;;  %vm1046_vm6 = vcmask 261312  }
  0x85   : > { %s1431_s30 = sshll.u32 %s484_s20, 3  ;;  %s1904_s20 = smov 88   ;;  %vm1258_vm7 = vcmask 523264  }
  0x86   : > { %s486_s21 = scalar_lea.vmem %s2349_s0, %s1431_s30  ;;  %s1905_s30 = smov 80  }
  0x87   : > { %v2161_v0 = vld [vmem:[%s486_s21] sm:$0xff]  ;;  %1499 = vmatpush3.bf16.msra.mxu0 %v1677_v9  ;;  %s1908_s21 = smov 104   ;;  %s1909_s15 = smov 64  }
  0x88   : > { %v492_v1 = vsel %vm491_vm0, %v2161_v0, 0.0  ;;  %1510 = vmatprep.subr.bf16.mxu0 %v1900_v8  ;;  %s1910_s27 = smov 56   ;;  %s1911_s14 = smov 48  }
  0x89   : > { %493 = vadd.xlane.f32.xlu0 %v492_v1  ;;  %s1912_s22 = smov 40   ;;  %s1913_s24 = smov 8  }
  0x8a   : > { %p2393_p3 = scmp.ne.s32.totalorder %s2379_s18, 0  ;;  %s1916_s28 = smov [#allocation11]  }
 0x116   : > { %v494_v2 = vpop.xlane.xlu0 %493 }
 0x117   : > { %v496_v3 = vmul.f32 0.03125, %v494_v2 }
 0x119   : > { %v497_v4 = vsub.f32 %v2161_v0, %v496_v3 }
 0x11b   : > { %v498_v5 = vmul.f32 %v497_v4, %v497_v4 }
 0x11d   : > { %v499_v6 = vsel %vm491_vm0, %v498_v5, 0.0 }
 0x11e   : > { %500 = vadd.xlane.f32.xlu0 %v499_v6 }
 0x1ab   : > { %v501_v10 = vpop.xlane.xlu0 %500 }
 0x1ac   : > { %v502_v11 = vmul.f32 0.03125, %v501_v10 }
 0x1ae   : > { %v503_v12 = vadd.f32 1e-06, %v502_v11 }
 0x1b0   : > { %1686 = vrsqrt.f32 %v503_v12 }
 0x1ba   : > { %v1687_v13 = vpop.eup %1686 }
 0x1bb   : > { %v505_v15 = vmul.f32 %v1687_v13, %v497_v4 }
 0x1bd   : > { %v512_v17 = vmul.f32 %v1432_v14, %v505_v15 }
 0x1bf   : > { %v519_v18 = vadd.f32 %v1433_v16, %v512_v17 }
 0x1c1   : > { %v520_v19 = vpack.c.bf16 %v519_v18, %v519_v18 }
 0x1c3   : > { %1501 = vmatmul.mubr.msk.bf16.vlgmr.msra.gmra.mrb[0].mxu0 %vm491_vm0, %v520_v19 }
 0x1c4   : > { %1512 = vmatprep.mubr.msk.bf16.mxu0 %vm1901_vm1, %v1900_v8 }
 0x296   : > { %v581_v21 = vpop.f32.mrb[0].mxu0 }
 0x297   : > { %v582_v22 = vadd.f32 %v1434_v20, %v581_v21  ;;  %v1502_v23 = vpop.f32.mrb[1].mxu0 }
 0x298   : > { %v584_v24 = vpop.f32.mrb[2].mxu0 }
 0x299   : > { %v2190_v25 = vpack.c.bf16 %v582_v22, %v582_v22  ;;  %v1503_v26 = vpop.f32.mrb[3].mxu0 }
 0x29b   : > { %700 = vrot.lane.b32.xlu0 %v2190_v25, %s1902_s17  ;;  %589 = vrot.lane.b32.xlu1 %v2190_v25, %s1903_s19  ;;  %s1914_s19 = smov 16   ;;  %s1824_s17 = sshll.u32 %s1916_s28, 4  ;;  %s1825_s17 = int_to_ptr.vmem [resolvable:$false] %s1824_s17 }
 0x29f   : > { %702 = vrot.lane.b32.xlu1 %v2190_v25, %s1904_s20  ;;  %s1915_s20 = smov 24  }
 0x2a3   : > { %818 = vrot.lane.b32.xlu1 %v2190_v25, %s1905_s30 }
 0x2a7   : > { %816 = vrot.lane.b32.xlu1 %v2190_v25, %s1906_s23 }
 0x2ab   : > { %934 = vrot.lane.b32.xlu1 %v2190_v25, %s1907_s25 }
 0x2af   : > { %932 = vrot.lane.b32.xlu1 %v2190_v25, %s1908_s21  ;;  %s1463_s21 = sshll.u32 %s2008_s29, 7 }
 0x30d   : > { %v590_v27 = vpop.permute.xlu1 %589  ;;  %v701_v32 = vpop.permute.xlu0 %700 }
 0x30e   : > { %v596_v28 = vsel %vm591_vm2, %v590_v27, 0 }
 0x30f   : > { %1505 = vmatpush3.bf16.xpose.msra.mxu1 %v596_v28 }
 0x310   : > { %1516 = vmatprep.subr.bf16.mxu1 %v1900_v8 }
 0x311   : > { %v703_v29 = vpop.permute.xlu1 %702 }
 0x312   : > { %v708_v30 = vsel %vm591_vm2, %v703_v29, 0 }
 0x315   : > { %v819_v31 = vpop.permute.xlu1 %818 }
 0x316   : > { %1507 = vmatmul.mubr.msk.bf16.vlgmr.msra.gmra.mrb[0].mxu1 %vm591_vm2, %v2190_v25  ;;  %v824_v34 = vsel %vm591_vm2, %v819_v31, 0 }
 0x317   : > { %1517 = vmatpush3.bf16.xpose.msra.mxu1 %v708_v30  ;;  %1518 = vmatprep.mubr.msk.bf16.mxu1 %vm1901_vm1, %v1900_v8 }
 0x318   : > { %1528 = vmatprep.subr.bf16.mxu1 %v1900_v8 }
 0x319   : > { %v817_v33 = vpop.permute.xlu1 %816 }
 0x31d   : > { %v935_v35 = vpop.permute.xlu1 %934 }
 0x31e   : > { %1519 = vmatmul.mubr.msk.bf16.vlgmr.msra.gmra.mrb[4].mxu1 %vm591_vm2, %v701_v32  ;;  %v940_v36 = vsel %vm591_vm2, %v935_v35, 0 }
 0x31f   : > { %1529 = vmatpush3.bf16.xpose.msra.mxu1 %v824_v34  ;;  %1530 = vmatprep.mubr.msk.bf16.mxu1 %vm1901_vm1, %v1900_v8 }
 0x320   : > { %1540 = vmatprep.subr.bf16.mxu1 %v1900_v8 }
 0x321   : > { %v933_v37 = vpop.permute.xlu1 %932 }
 0x326   : > { %1531 = vmatmul.mubr.msk.bf16.vlgmr.msra.gmra.mrb[8].mxu1 %vm591_vm2, %v817_v33 }
 0x327   : > { %1541 = vmatpush3.bf16.xpose.msra.mxu1 %v940_v36  ;;  %1542 = vmatprep.mubr.msk.bf16.mxu1 %vm1901_vm1, %v1900_v8 }
 0x328   : > { %1552 = vmatprep.subr.bf16.mxu1 %v1900_v8 }
 0x32e   : > { %1543 = vmatmul.mubr.msk.bf16.vlgmr.msra.gmra.mrb[12].mxu1 %vm591_vm2, %v933_v37 }
 0x32f   : > { %1556 = vmatprep.mubr.msk.bf16.mxu1 %vm1901_vm1, %v1900_v8 }
 0x3e9   : > { %v632_v38 = vpop.f32.mrb[0].mxu1 }
 0x3ea   : > { %v1508_v39 = vpop.f32.mrb[1].mxu1  ;;  %v638_v40 = vsel %vm591_vm2, %v632_v38, -inf }
 0x3eb   : > { %639 = vmax.xlane.f32.xlu1 %v638_v40  ;;  %v635_v41 = vpop.f32.mrb[2].mxu1 }
 0x3ec   : > { %v1509_v42 = vpop.f32.mrb[3].mxu1 }
 0x3f1   : > { %v744_v43 = vpop.f32.mrb[4].mxu1 }
 0x3f2   : > { %v1520_v44 = vpop.f32.mrb[5].mxu1  ;;  %v750_v45 = vsel %vm591_vm2, %v744_v43, -inf }
 0x3f3   : > { %751 = vmax.xlane.f32.xlu0 %v750_v45  ;;  %v747_v46 = vpop.f32.mrb[6].mxu1 }
 0x3f4   : > { %v1521_v47 = vpop.f32.mrb[7].mxu1 }
 0x3f9   : > { %v860_v48 = vpop.f32.mrb[8].mxu1 }
 0x3fa   : > { %v1532_v49 = vpop.f32.mrb[9].mxu1  ;;  %v866_v50 = vsel %vm591_vm2, %v860_v48, -inf }
 0x3fb   : > { %867 = vmax.xlane.f32.xlu1 %v866_v50  ;;  %v863_v51 = vpop.f32.mrb[10].mxu1  ;;  %v1679_v49 = vld [vmem:[%s2354_s5 + $0x8] sm:$0xff]  }
 0x3fc   : > { %v1533_v52 = vpop.f32.mrb[11].mxu1 }
 0x401   : > { %v976_v53 = vpop.f32.mrb[12].mxu1 }
 0x402   : > { %v1544_v54 = vpop.f32.mrb[13].mxu1  ;;  %v982_v55 = vsel %vm591_vm2, %v976_v53, -inf }
 0x403   : > { %983 = vmax.xlane.f32.xlu0 %v982_v55  ;;  %v979_v56 = vpop.f32.mrb[14].mxu1 }
 0x404   : > { %v1545_v57 = vpop.f32.mrb[15].mxu1 }
 0x478   : > { %v640_v58 = vpop.xlane.xlu1 %639 }
 0x479   : > { %v641_v59 = vsub.f32 %v632_v38, %v640_v58 }
 0x47b   : > { %v642_v60 = vmul.f32 1.442695, %v641_v59 }
 0x47d   : > { %1688 = vpow2.f32 %v642_v60 }
 0x480   : > { %v752_v61 = vpop.xlane.xlu0 %751 }
 0x481   : > { %v753_v62 = vsub.f32 %v744_v43, %v752_v61 }
 0x483   : > { %v754_v63 = vmul.f32 1.442695, %v753_v62 }
 0x485   : > { %1690 = vpow2.f32 %v754_v63  ;;  %v1446_v63 = vld [vmem:[#allocation6] ss:$0 sm:$0xff] }
 0x487   : > { %v1689_v1 = vpop.eup %1688 }
 0x488   : > { %v644_v2 = vsel %vm591_vm2, %v1689_v1, 0.0  ;;  %v868_v11 = vpop.xlane.xlu1 %867 }
 0x489   : > { %645 = vadd.xlane.f32.xlu1 %v644_v2  ;;  %v869_v12 = vsub.f32 %v860_v48, %v868_v11  ;;  %v1678_v48 = vld [vmem:[%s2354_s5] sm:$0xff]  }
 0x48a   : > { %1553 = vmatpush3.bf16.msra.mxu1 %v1678_v48 }
 0x48b   : > { %v870_v13 = vmul.f32 1.442695, %v869_v12  ;;  %1554 = vmatprep.subr.bf16.mxu1 %v1900_v8 }
 0x48e   : > { %1555 = vmatpush3.bf16.msra.mxu1 %v1679_v49 }
 0x48f   : > { %v1691_v3 = vpop.eup %1690  ;;  %1568 = vmatprep.subr.bf16.mxu1 %v1900_v8 }
 0x490   : > { %v984_v4 = vpop.xlane.xlu0 %983  ;;  %v756_v5 = vsel %vm591_vm2, %v1691_v3, 0.0 }
 0x491   : > { %v985_v6 = vsub.f32 %v976_v53, %v984_v4  ;;  %757 = vadd.xlane.f32.xlu0 %v756_v5 }
 0x493   : > { %v986_v7 = vmul.f32 1.442695, %v985_v6 }
 0x495   : > { %1692 = vpow2.f32 %v986_v7 }
 0x496   : > { %1694 = vpow2.f32 %v870_v13 }
 0x49a   : > { %650 = vrot.lane.b32.xlu1 %v2190_v25, %s1909_s15 }
 0x49f   : > { %v1693_v9 = vpop.eup %1692 }
 0x4a0   : > { %v988_v10 = vsel %vm591_vm2, %v1693_v9, 0.0  ;;  %v1695_v14 = vpop.eup %1694 }
 0x4a1   : > { %989 = vadd.xlane.f32.xlu0 %v988_v10  ;;  %v872_v15 = vsel %vm591_vm2, %v1695_v14, 0.0 }
 0x4b7   : > { %762 = vrot.lane.b32.xlu0 %v2190_v25, %s1910_s27 }
 0x4be   : > { %873 = vadd.xlane.f32.xlu1 %v872_v15 }
 0x4cf   : > { %878 = vrot.lane.b32.xlu1 %v2190_v25, %s1911_s14 }
 0x4d3   : > { %994 = vrot.lane.b32.xlu1 %v2190_v25, %s1912_s22 }
 0x516   : > { %v646_v16 = vpop.xlane.xlu1 %645 }
 0x517   : > { %1696 = vrcp.f32 %v646_v16 }
 0x51a   : > { %v651_v17 = vpop.permute.xlu1 %650 }
 0x51b   : > { %v657_v18 = vsel %vm655_vm3, %v651_v17, 0 }
 0x51c   : > { %1511 = vmatpush3.bf16.msra.mxu0 %v657_v18 }
 0x51d   : > { %1522 = vmatprep.subr.bf16.mxu0 %v1900_v8 }
 0x51e   : > { %v758_v20 = vpop.xlane.xlu0 %757 }
 0x51f   : > { %1698 = vrcp.f32 %v758_v20 }
 0x521   : > { %v1697_v19 = vpop.eup %1696 }
 0x522   : > { %v648_v21 = vmul.f32 %v1697_v19, %v1689_v1  ;;  %v1450_v19 = vld [vmem:[#allocation8] ss:$0 sm:$0xff] }
 0x524   : > { %v649_v22 = vpack.c.bf16 %v648_v21, %v648_v21  ;;  %v1451_v21 = vld [vmem:[#allocation9] ss:$0 sm:$0xff] }
 0x526   : > { %1513 = vmatmul.mubr.msk.bf16.vlgmr.msra.gmra.mrb[4].mxu0 %vm591_vm2, %v649_v22 }
 0x527   : > { %1524 = vmatprep.mubr.msk.bf16.mxu0 %vm1901_vm1, %v1900_v8 }
 0x529   : > { %v1699_v23 = vpop.eup %1698 }
 0x52a   : > { %v760_v25 = vmul.f32 %v1699_v23, %v1691_v3 }
 0x52c   : > { %v761_v28 = vpack.c.bf16 %v760_v25, %v760_v25  ;;  %v1682_v25 = vld [vmem:[%s2360_s11] sm:$0xff]  }
 0x52e   : > { %v990_v24 = vpop.xlane.xlu0 %989 }
 0x532   : > { %v763_v26 = vpop.permute.xlu0 %762 }
 0x533   : > { %v768_v27 = vsel %vm655_vm3, %v763_v26, 0  ;;  %v1683_v26 = vld [vmem:[%s2360_s11 + $0x8] sm:$0xff]  }
 0x534   : > { %1523 = vmatpush3.bf16.msra.mxu0 %v768_v27  ;;  %v1684_v27 = vld [vmem:[%s2360_s11 + $0x10] sm:$0xff]  }
 0x535   : > { %1534 = vmatprep.subr.bf16.mxu0 %v1900_v8 }
 0x537   : > { %1525 = vmatmul.mubr.msk.bf16.vlgmr.msra.gmra.mrb[8].mxu0 %vm591_vm2, %v761_v28  ;;  %v1685_v28 = vld [vmem:[%s2360_s11 + $0x18] sm:$0xff]  }
 0x538   : > { %1536 = vmatprep.mubr.msk.bf16.mxu0 %vm1901_vm1, %v1900_v8 }
 0x54b   : > { %v874_v29 = vpop.xlane.xlu1 %873 }
 0x54c   : > { %1700 = vrcp.f32 %v874_v29  ;;  %v1452_v29 = vld [vmem:[%s2359_s10] ss:$0 sm:$0xff] }
 0x54d   : > { %1702 = vrcp.f32 %v990_v24 }
 0x54f   : > { %v879_v30 = vpop.permute.xlu1 %878 }
 0x550   : > { %v884_v31 = vsel %vm655_vm3, %v879_v30, 0 }
 0x551   : > { %1535 = vmatpush3.bf16.msra.mxu0 %v884_v31 }
 0x552   : > { %1546 = vmatprep.subr.bf16.mxu0 %v1900_v8 }
 0x553   : > { %v995_v34 = vpop.permute.xlu1 %994 }
 0x554   : > { %v1000_v37 = vsel %vm655_vm3, %v995_v34, 0 }
 0x556   : > { %v1701_v32 = vpop.eup %1700 }
 0x557   : > { %v876_v33 = vmul.f32 %v1701_v32, %v1695_v14  ;;  %v1703_v36 = vpop.eup %1702  ;;  %v1680_v14 = vld [vmem:[%s2358_s9] sm:$0xff]  }
 0x558   : > { %v992_v38 = vmul.f32 %v1703_v36, %v1693_v9 }
 0x559   : > { %v877_v35 = vpack.c.bf16 %v876_v33, %v876_v33 }
 0x55a   : > { %v993_v39 = vpack.c.bf16 %v992_v38, %v992_v38 }
 0x55b   : > { %1537 = vmatmul.mubr.msk.bf16.vlgmr.msra.gmra.mrb[12].mxu0 %vm591_vm2, %v877_v35 }
 0x55c   : > { %1547 = vmatpush3.bf16.msra.mxu0 %v1000_v37  ;;  %1548 = vmatprep.mubr.msk.bf16.mxu0 %vm1901_vm1, %v1900_v8 }
 0x55d   : > { %1560 = vmatprep.subr.bf16.mxu0 %v1900_v8 }
 0x563   : > { %1549 = vmatmul.mubr.msk.bf16.vlgmr.msra.gmra.mrb[16].mxu0 %vm591_vm2, %v993_v39 }
 0x564   : > { %1564 = vmatprep.mubr.msk.bf16.mxu0 %vm1901_vm1, %v1900_v8  ;;  %1561 = vmatpush3.bf16.msra.mxu0 %v1680_v14 }
 0x565   : > { %1562 = vmatprep.subr.bf16.mxu0 %v1900_v8 }
 0x5f9   : > { %v693_v40 = vpop.f32.mrb[4].mxu0 }
 0x5fa   : > { %699 = vst.msk [vmem:[#allocation2] sm:$0xff] %vm591_vm2, %v693_v40  ;;  %v1514_v41 = vpop.f32.mrb[5].mxu0  ;;  %v1456_v40 = vld [vmem:[%s2361_s12] ss:$0 sm:$0xff] }
 0x5fb   : > { %v696_v42 = vpop.f32.mrb[6].mxu0 }
 0x5fc   : > { %v1515_v43 = vpop.f32.mrb[7].mxu0 }
 0x60a   : > { %v804_v44 = vpop.f32.mrb[8].mxu0 }
 0x60b   : > { %811 = vrot.lane.b32.xlu0 %v804_v44, %s1913_s24  ;;  %v1526_v45 = vpop.f32.mrb[9].mxu0  ;;  %s2392_s24 = sld [smem:[#allocation22_spill]] }
 0x60c   : > { %v807_v46 = vpop.f32.mrb[10].mxu0 }
 0x60d   : > { %v1527_v47 = vpop.f32.mrb[11].mxu0 }
 0x611   : > { %s2306_s13 = scalar_lea.hbm %s2392_s24, %s1463_s21 }
 0x62e   : > { %v920_v50 = vpop.f32.mrb[12].mxu0 }
 0x62f   : > { %927 = vrot.lane.b32.xlu1 %v920_v50, %s1914_s19  ;;  %v1538_v51 = vpop.f32.mrb[13].mxu0  ;;  %s1826_s19 = scalar_lea.vmem %s1825_s17, 256 }
 0x630   : > { %v923_v52 = vpop.f32.mrb[14].mxu0 }
 0x631   : > { %v1539_v53 = vpop.f32.mrb[15].mxu0 }
 0x636   : > { %v1036_v54 = vpop.f32.mrb[16].mxu0 }
 0x637   : > { %1043 = vrot.lane.b32.xlu0 %v1036_v54, %s1915_s20  ;;  %v1550_v55 = vpop.f32.mrb[17].mxu0  ;;  %s480_s20 = sand.u32 1, %s1886_s26  }
 0x638   : > { %v1039_v56 = vpop.f32.mrb[18].mxu0  ;;  %s1430_s30 = sshll.u32 %s480_s20, 3  ;;  %s1305_s29 = scalar_lea.sflag [#allocation5], %s480_s20 }
 0x639   : > { %v1551_v57 = vpop.f32.mrb[19].mxu0  ;;  %s482_s15 = scalar_lea.vmem [#allocation11], %s1430_s30 }
 0x63a   : > { %s1318_s27 = sshll.u32 %s482_s15, 4  ;;  %s2308_s27 = int_to_ptr.vmem [resolvable:$true] %s1318_s27 }
 0x63b   : > { %s1820_s16 = scalar_lea.vmem %s2308_s27, 128  ;;  %p1827_p8 = scmp.lt.s32.totalorder %s2308_s27, %s1825_s17 }
 0x63c   : > { %p1821_p2 = scmp.ne.s32.totalorder %s2308_s27, %s1820_s16  ;;  %p1828_p11 = scmp.lt.s32.totalorder %s1826_s19, %s1820_s16 }
 0x63e   : > { %p1822_p4 = pnand %p1821_p2, %p2393_p3  ;;  %p1829_p13 = por %p1828_p11, %p1827_p8 }
 0x640   : > { %p1823_p7 = pneg %p1822_p4 }
 0x642   : > { %p1830_p1 = pnand %p1829_p13, %p1823_p7 }
 0x67d   : > { %v812_v58 = vpop.permute.xlu0 %811 }
 0x67e   : > { %815 = vst.msk [vmem:[#allocation2] sm:$0xff] %vm814_vm4, %v812_v58 }
 0x6a1   : > { %v928_v59 = vpop.permute.xlu1 %927 }
 0x6a2   : > { %931 = vst.msk [vmem:[#allocation2] sm:$0xff] %vm930_vm5, %v928_v59 }
 0x6a9   : > { %v1044_v60 = vpop.permute.xlu0 %1043 }
 0x6aa   : > { %1047 = vst.msk [vmem:[#allocation2] sm:$0xff] %vm1046_vm6, %v1044_v60 }
 0x6b1   : > { %v1048_v61 = vld [vmem:[#allocation2] sm:$0xff] }
 0x6b2   : > { %v1049_v62 = vpack.c.bf16 %v1048_v61, %v1048_v61 }
 0x6b4   : > { %1557 = vmatmul.mubr.msk.bf16.vlgmr.msra.gmra.mrb[16].mxu1 %vm491_vm0, %v1049_v62 }
 0x6b5   : > { %1576 = vmatprep.mubr.msk.bf16.mxu1 %vm1901_vm1, %v1900_v8  ;;  %1569 = vmatpush3.bf16.msra.mxu1 %v1682_v25 }
 0x6b6   : > { %1570 = vmatprep.subr.bf16.mxu1 %v1900_v8 }
 0x6b9   : > { %1571 = vmatpush3.bf16.msra.mxu1 %v1683_v26 }
 0x6ba   : > { %1572 = vmatprep.subr.bf16.mxu1 %v1900_v8 }
 0x6bd   : > { %1573 = vmatpush3.bf16.msra.mxu1 %v1684_v27 }
 0x6be   : > { %1574 = vmatprep.subr.bf16.mxu1 %v1900_v8 }
 0x6c1   : > { %1575 = vmatpush3.bf16.msra.mxu1 %v1685_v28 }
 0x787   : > { %v1110_v1 = vpop.f32.mrb[16].mxu1 }
 0x788   : > { %v1111_v2 = vadd.f32 %v1446_v63, %v1110_v1  ;;  %v1558_v3 = vpop.f32.mrb[17].mxu1 }
 0x789   : > { %v1113_v4 = vpop.f32.mrb[18].mxu1 }
 0x78a   : > { %v2265_v5 = vadd.f32 %v1111_v2, %v2161_v0  ;;  %v1559_v6 = vpop.f32.mrb[19].mxu1  ;;  %v1681_v0 = vld [vmem:[%s2358_s9 + $0x8] sm:$0xff]  }
 0x78b   : > { %1563 = vmatpush3.bf16.msra.mxu0 %v1681_v0 }
 0x78c   : > { %v1119_v7 = vsel %vm491_vm0, %v2265_v5, 0.0 }
 0x78d   : > { %1120 = vadd.xlane.f32.xlu1 %v1119_v7 }
 0x81a   : > { %v1121_v9 = vpop.xlane.xlu1 %1120 }
 0x81b   : > { %v1122_v10 = vmul.f32 0.03125, %v1121_v9 }
 0x81d   : > { %v1123_v11 = vsub.f32 %v2265_v5, %v1122_v10 }
 0x81f   : > { %v1124_v12 = vmul.f32 %v1123_v11, %v1123_v11 }
 0x821   : > { %v1125_v13 = vsel %vm491_vm0, %v1124_v12, 0.0 }
 0x822   : > { %1126 = vadd.xlane.f32.xlu0 %v1125_v13 }
 0x8af   : > { %v1127_v15 = vpop.xlane.xlu0 %1126 }
 0x8b0   : > { %v1128_v16 = vmul.f32 0.03125, %v1127_v15 }
 0x8b2   : > { %v1129_v17 = vadd.f32 1e-06, %v1128_v16 }
 0x8b4   : > { %1704 = vrsqrt.f32 %v1129_v17 }
 0x8be   : > { %v1705_v18 = vpop.eup %1704 }
 0x8bf   : > { %v1131_v20 = vmul.f32 %v1705_v18, %v1123_v11 }
 0x8c1   : > { %v1138_v22 = vmul.f32 %v1450_v19, %v1131_v20 }
 0x8c3   : > { %v1145_v23 = vadd.f32 %v1451_v21, %v1138_v22 }
 0x8c5   : > { %v1146_v24 = vpack.c.bf16 %v1145_v23, %v1145_v23 }
 0x8c7   : > { %1565 = vmatmul.mubr.msk.bf16.vlgmr.msra.gmra.mrb[20].mxu0 %vm491_vm0, %v1146_v24 }
 0x99a   : > { %v1207_v30 = vpop.f32.mrb[20].mxu0 }
 0x99b   : > { %v1208_v31 = vadd.f32 %v1452_v29, %v1207_v30  ;;  %v1566_v32 = vpop.f32.mrb[21].mxu0 }
 0x99c   : > { %v1210_v33 = vpop.f32.mrb[22].mxu0 }
 0x99d   : > { %v1214_v34 = vmul.f32 0.70710677, %v1208_v31  ;;  %v1567_v35 = vpop.f32.mrb[23].mxu0  ;;  %v1213_v8 = vmul.f32 0.5, %v1208_v31 }
 0x99f   : > { %1706 = verf.f32 %v1214_v34 }
 0x9a9   : > { %v1707_v36 = vpop.eup %1706 }
 0x9aa   : > { %v1216_v37 = vadd.f32 1.0, %v1707_v36 }
 0x9ac   : > { %v1217_v38 = vmul.f32 %v1216_v37, %v1213_v8 }
 0x9ae   : > { %v1218_v39 = vpack.c.bf16 %v1217_v38, %v1217_v38 }
 0x9b0   : > { %1577 = vmatmul.mubr.msk.bf16.vlgmr.msra.gmra.mrb[20].mxu1 %vm1258_vm7, %v1218_v39 }
 0xa83   : > { %v1296_v41 = vpop.f32.mrb[20].mxu1 }
 0xa84   : > { %v1297_v42 = vadd.f32 %v1456_v40, %v1296_v41  ;;  %v1578_v43 = vpop.f32.mrb[21].mxu1 }
 0xa85   : > { %v1299_v44 = vpop.f32.mrb[22].mxu1 }
 0xa86   : > { %v1302_v45 = vadd.f32 %v1297_v42, %v2265_v5  ;;  %v1579_v46 = vpop.f32.mrb[23].mxu1 }
 0xa88   : > { %1303 = vst.msk [vmem:[%s482_s15] sm:$0xff] %vm491_vm0, %v1302_v45 }
 0xa89   : > { %1833 = shalt.err (!%p1830_p1)
}
 0xa8a   : > { %s1834_s20 = scalar_lea.hbm %s2306_s13, 128  ;;  %s1838_s25 = scalar_lea.hbm %s2392_s24, 256 }
 0xa8b   : > { %p1835_p0 = scmp.ne.s32.totalorder %s2306_s13, %s1834_s20  ;;  %p1839_p9 = scmp.lt.u32.totalorder %s2306_s13, %s2392_s24 }
 0xa8c   : > { %p1840_p12 = scmp.lt.u32.totalorder %s1838_s25, %s1834_s20  ;;  %p1842_p2 = scmp.lt.u32.totalorder %s1834_s20, %s2306_s13 }
 0xa8d   : > { %p1836_p6 = pnand %p1835_p0, %p2393_p3 }
 0xa8e   : > { %p1841_p10 = por %p1840_p12, %p1839_p9 }
 0xa8f   : > { %p1837_p5 = pneg %p1836_p6 }
 0xa90   : > { %p1843_p4 = por %p1842_p2, %p1841_p10 }
 0xa92   : > { %p1844_p7 = pnand %p1843_p4, %p1837_p5 }
 0xa94   : > { %1847 = shalt.err (!%p1844_p7)
}
 0xa95   : > { %1596 = dma.vmem_to_hbm [thread:$0]  (%p2393_p3), %s2308_s27, 128, %s2306_s13, %s1305_s29  }
 0xa96 PF: > { %s2394_s14 = sld [smem:[#allocation18_spill]]  ;;  %s2395_s22 = sld [smem:[#allocation16_spill]] }
 0xa97   : > { %s2396_s16 = sld [smem:[#allocation21_spill]] }
 0xa9c   : > { %p1623_p8 = scmp.ge.s32.totalorder %s2394_s14, 2  ;;  %s1330_s28 = sand.u32 1, %s2395_s22  }
 0xa9d   : > { %p2397_p11 = scmp.ne.s32.totalorder %s2396_s16, 0  ;;  %s1331_s17 = scalar_lea.sflag [#allocation5], %s1330_s28 }
 0xa9f   : > { %p1612_p13 = pnand %p1623_p8, %p2397_p11 }
 0xaa1   : > { %1877 = dma.done.wait (!%p1612_p13), %s1331_s17, 128  }
 0xaa2   : > { %1879 = vsyncadd (!%p1612_p13), %s1331_s17, 4294967168  ;;  %s2398_s28 = sld [smem:[#allocation19_spill]]  ;;  %s2399_s19 = sld [smem:[#allocation17_spill]] }
 0xaa3   : > { %s2400_s27 = sld [smem:[#allocation20_spill]]  ;;  %s2401_s25 = smov %s1886_s26 }
 0xaa8   : > { %p26_p1 = scmp.ge.s32.totalorder %s2398_s28, 4   ;;  %s2402_s26 = smov %s2399_s19 }
 0xaaa   :  { %28 = sbr.rel (!%p26_p1) target bundleno = 8 (0x8), region = 124 }
 0xab1   :  { %1336 = vsyncpa [#allocation4], 1 }
 0xab2   :  { %1338 = vsyncpa [#allocation4 + $0x1], 1 }
 0xab3   :  { %1339 = vsyncpa [#allocation7], 1 }
 0xab4   :  { %1340 = vsyncpa [#allocation10], 1 }
 0xab5   :  { %1341 = vsyncpa [#allocation5], 1 }
 0xab6   :  { %1343 = vsyncpa [#allocation5 + $0x1], 1 }

</bundles_post_ra>
